<compile_context>
chip_gen: v7x
topology: tpu7x:2x2x1
jax: 0.10.0
libtpu: 0.0.40
codegen_flags: <defaults>
</compile_context>

<pallas_src>
import functools

import numpy as np
import jax
import jax.numpy as jnp
from jax.experimental import pallas as pl
from jax.experimental.pallas import tpu as pltpu

# RGB -> YCbCr (JPEG) coefficients / shift, exactly as in the PyTorch module.
_COEF = (
    (0.299, 0.587, 0.114),          # Y
    (-0.168736, -0.331264, 0.5),    # Cb
    (0.5, -0.418688, -0.081312),    # Cr
)
_SHIFT = (0.0, 128.0, 128.0)

_LANE = 128  # lane-chunk width used for the interleave matmuls


def _interleave_selectors(chunk):
    """sel[c, l, k] = 1  iff  k == 3*l + c   (one-hot lane-interleave matrices).

    plane(R, chunk) @ sel[c] scatters plane column w into interleaved column
    3*w + c of an (R, 3*chunk) output slab.  Entries are 0/1, exact in bf16.
    """
    l = np.arange(chunk)[:, None]
    k = np.arange(3 * chunk)[None, :]
    sel = np.stack([(k == 3 * l + c) for c in range(3)], axis=0)
    return jnp.asarray(sel, dtype=jnp.bfloat16)


def _pick_rows(H, W, budget_bytes=3 * 1024 * 1024):
    """Rows per strip: divides H, is a multiple of 8 (or all of H), and keeps
    the f32 in+out strip (24 bytes per pixel of width W) under `budget_bytes`
    so the double-buffered working set fits comfortably in VMEM on all chips."""
    limit = max(1, budget_bytes // (24 * W))
    best = None
    for r in range(1, H + 1):
        if H % r:
            continue
        if r != H and r % 8:
            continue
        if r <= limit:
            best = r
    if best is not None:
        return best
    return 8 if H % 8 == 0 else H


def _rgb_to_ycbcr_kernel(sel_ref, x_ref, o_ref, *, width, chunk):
    # sel_ref: (3, chunk, 3*chunk) bf16   0/1 interleave selectors
    # x_ref  : (1, 3, rows, width) f32    RGB strip, channel-planar (lane-dense)
    # o_ref  : (1, rows, 3*width)  f32    YCbCr strip, pixel-interleaved (lane-dense)
    for start in range(0, width, chunk):
        cur = min(chunk, width - start)
        cols = slice(start, start + cur)

        r = x_ref[0, 0, :, cols]
        g = x_ref[0, 1, :, cols]
        b = x_ref[0, 2, :, cols]

        # Colour mix on the VPU, in f32 (shift folded in).
        y = _COEF[0][0] * r + _COEF[0][1] * g + _COEF[0][2] * b + _SHIFT[0]
        cb = _COEF[1][0] * r + _COEF[1][1] * g + _COEF[1][2] * b + _SHIFT[1]
        cr = _COEF[2][0] * r + _COEF[2][1] * g + _COEF[2][2] * b + _SHIFT[2]

        # Interleave the three planes into out[:, 3*w + c] with one-hot
        # permutation matmuls.  Splitting each f32 plane into two bf16 terms
        # makes the bf16 matmuls an (essentially) exact pass-through.
        z = None
        for c, plane in enumerate((y, cb, cr)):
            s = sel_ref[c, :cur, : 3 * cur]
            hi = plane.astype(jnp.bfloat16)
            lo = (plane - hi.astype(jnp.float32)).astype(jnp.bfloat16)
            term = jnp.dot(hi, s, preferred_element_type=jnp.float32)
            term = term + jnp.dot(lo, s, preferred_element_type=jnp.float32)
            z = term if z is None else z + term

        o_ref[0, :, 3 * start : 3 * (start + cur)] = z


def rgb_to_ycbcr_jpeg(image, *, rows_per_strip=None):
    """RGB (B, 3, H, W) -> YCbCr (B, H, W, 3), matching the PyTorch module."""
    B, C, H, W = image.shape
    assert C == 3, "expected a 3-channel RGB input"
    image = image.astype(jnp.float32)

    chunk = min(_LANE, W)
    rows = _pick_rows(H, W) if rows_per_strip is None else rows_per_strip
    assert H % rows == 0 and (rows == H or rows % 8 == 0), (
        f"rows_per_strip={rows} must divide H={H} and be a multiple of 8")
    n_strips = H // rows

    sel = _interleave_selectors(chunk)
    kernel = functools.partial(_rgb_to_ycbcr_kernel, width=W, chunk=chunk)

    out = pl.pallas_call(
        kernel,
        out_shape=jax.ShapeDtypeStruct((B, H, 3 * W), jnp.float32),
        grid=(B, n_strips),
        in_specs=[
            # constant selectors: same block every step -> fetched once
            pl.BlockSpec((3, chunk, 3 * chunk), lambda bb, ss: (0, 0, 0)),
            # one channel-planar row strip per step
            pl.BlockSpec((1, 3, rows, W), lambda bb, ss: (bb, 0, ss, 0)),
        ],
        # lane-dense output strip (3*W wide)
        out_specs=pl.BlockSpec((1, rows, 3 * W), lambda bb, ss: (bb, ss, 0)),
        compiler_params=pltpu.CompilerParams(
            dimension_semantics=("parallel", "parallel")),
    )(sel, image)

    # Free reshape: (B, H, 3W) and (B, H, W, 3) have identical row-major layout.
    return out.reshape(B, H, W, 3)


def rgb_to_ycbcr_jpeg_ref(image):
    """Pure-JAX reference mirroring the PyTorch forward."""
    matrix = jnp.asarray(np.array(_COEF, dtype=np.float32).T)
    shift = jnp.asarray(np.array(_SHIFT, dtype=np.float32))
    x = jnp.transpose(image.astype(jnp.float32), (0, 2, 3, 1))
    return jnp.tensordot(x, matrix, axes=1,
                         precision=jax.lax.Precision.HIGHEST) + shift


if __name__ == "__main__":
    key = jax.random.PRNGKey(0)
    B, C, H, W = 2, 3, 64, 256
    image = jax.random.uniform(
        key, (B, C, H, W), dtype=jnp.float32, minval=0.0, maxval=255.0)

    # rows_per_strip=16 exercises the multi-strip grid and multi-chunk path.
    out = rgb_to_ycbcr_jpeg(image, rows_per_strip=16)
    out = jax.block_until_ready(out)

    ref = rgb_to_ycbcr_jpeg_ref(image)
    assert out.shape == (B, H, W, 3), out.shape
    max_diff = float(jnp.max(jnp.abs(out - ref)))
    assert jnp.allclose(out, ref, rtol=1e-5, atol=1e-3), f"max diff {max_diff}"

    print("KERNEL_OK")
</pallas_src>

<mosaic_0001>
module attributes {stable_mosaic.version = 11 : i64} {
  func.func @_rgb_to_ycbcr_kernel(%arg0: i32, %arg1: i32, %arg2: memref<3x128x384xbf16, #tpu.memory_space<vmem>>, %arg3: memref<1x3x16x256xf32, #tpu.memory_space<vmem>>, %arg4: memref<1x16x768xf32, #tpu.memory_space<vmem>>) attributes {dimension_semantics = [#tpu.dimension_semantics<parallel>, #tpu.dimension_semantics<parallel>], iteration_bounds = array<i64: 2, 4>, scalar_prefetch = 0 : i64, scratch_operands = 0 : i64, tpu.core_type = #tpu.core_type<tc>, window_params = [{pipeline_mode = #tpu.pipeline_mode<synchronous>, transform_indices = @transform_0, window_bounds = array<i64: 3, 128, 384>}, {transform_indices = @transform_1, window_bounds = array<i64: 1, 3, 16, 256>}, {transform_indices = @transform_2, window_bounds = array<i64: 1, 16, 768>}]} {
    %c0 = arith.constant 0 : index
    %c0_0 = arith.constant 0 : index
    %c0_1 = arith.constant 0 : index
    %c0_2 = arith.constant 0 : index
    %0 = vector.load %arg3[%c0, %c0_0, %c0_1, %c0_2] : memref<1x3x16x256xf32, #tpu.memory_space<vmem>>, vector<1x1x16x128xf32>
    %1 = vector.shape_cast %0 : vector<1x1x16x128xf32> to vector<16x128xf32>
    %c0_3 = arith.constant 0 : index
    %c1 = arith.constant 1 : index
    %c0_4 = arith.constant 0 : index
    %c0_5 = arith.constant 0 : index
    %2 = vector.load %arg3[%c0_3, %c1, %c0_4, %c0_5] : memref<1x3x16x256xf32, #tpu.memory_space<vmem>>, vector<1x1x16x128xf32>
    %3 = vector.shape_cast %2 : vector<1x1x16x128xf32> to vector<16x128xf32>
    %c0_6 = arith.constant 0 : index
    %c2 = arith.constant 2 : index
    %c0_7 = arith.constant 0 : index
    %c0_8 = arith.constant 0 : index
    %4 = vector.load %arg3[%c0_6, %c2, %c0_7, %c0_8] : memref<1x3x16x256xf32, #tpu.memory_space<vmem>>, vector<1x1x16x128xf32>
    %5 = vector.shape_cast %4 : vector<1x1x16x128xf32> to vector<16x128xf32>
    %cst = arith.constant 2.990000e-01 : f32
    %6 = vector.broadcast %cst : f32 to vector<16x128xf32>
    %7 = arith.mulf %6, %1 : vector<16x128xf32>
    %cst_9 = arith.constant 5.870000e-01 : f32
    %8 = vector.broadcast %cst_9 : f32 to vector<16x128xf32>
    %9 = arith.mulf %8, %3 : vector<16x128xf32>
    %10 = arith.addf %7, %9 : vector<16x128xf32>
    %cst_10 = arith.constant 1.140000e-01 : f32
    %11 = vector.broadcast %cst_10 : f32 to vector<16x128xf32>
    %12 = arith.mulf %11, %5 : vector<16x128xf32>
    %13 = arith.addf %10, %12 : vector<16x128xf32>
    %cst_11 = arith.constant 0.000000e+00 : f32
    %14 = vector.broadcast %cst_11 : f32 to vector<16x128xf32>
    %15 = arith.addf %13, %14 : vector<16x128xf32>
    %cst_12 = arith.constant -1.687360e-01 : f32
    %16 = vector.broadcast %cst_12 : f32 to vector<16x128xf32>
    %17 = arith.mulf %16, %1 : vector<16x128xf32>
    %cst_13 = arith.constant -3.312640e-01 : f32
    %18 = vector.broadcast %cst_13 : f32 to vector<16x128xf32>
    %19 = arith.mulf %18, %3 : vector<16x128xf32>
    %20 = arith.addf %17, %19 : vector<16x128xf32>
    %cst_14 = arith.constant 5.000000e-01 : f32
    %21 = vector.broadcast %cst_14 : f32 to vector<16x128xf32>
    %22 = arith.mulf %21, %5 : vector<16x128xf32>
    %23 = arith.addf %20, %22 : vector<16x128xf32>
    %cst_15 = arith.constant 1.280000e+02 : f32
    %24 = vector.broadcast %cst_15 : f32 to vector<16x128xf32>
    %25 = arith.addf %23, %24 : vector<16x128xf32>
    %cst_16 = arith.constant 5.000000e-01 : f32
    %26 = vector.broadcast %cst_16 : f32 to vector<16x128xf32>
    %27 = arith.mulf %26, %1 : vector<16x128xf32>
    %cst_17 = arith.constant -4.186880e-01 : f32
    %28 = vector.broadcast %cst_17 : f32 to vector<16x128xf32>
    %29 = arith.mulf %28, %3 : vector<16x128xf32>
    %30 = arith.addf %27, %29 : vector<16x128xf32>
    %cst_18 = arith.constant -8.131200e-02 : f32
    %31 = vector.broadcast %cst_18 : f32 to vector<16x128xf32>
    %32 = arith.mulf %31, %5 : vector<16x128xf32>
    %33 = arith.addf %30, %32 : vector<16x128xf32>
    %cst_19 = arith.constant 1.280000e+02 : f32
    %34 = vector.broadcast %cst_19 : f32 to vector<16x128xf32>
    %35 = arith.addf %33, %34 : vector<16x128xf32>
    %c0_20 = arith.constant 0 : index
    %c0_21 = arith.constant 0 : index
    %c0_22 = arith.constant 0 : index
    %36 = vector.load %arg2[%c0_20, %c0_21, %c0_22] : memref<3x128x384xbf16, #tpu.memory_space<vmem>>, vector<1x128x384xbf16>
    %37 = vector.shape_cast %36 : vector<1x128x384xbf16> to vector<128x384xbf16>
    %38 = arith.truncf %15 : vector<16x128xf32> to vector<16x128xbf16>
    %39 = arith.extf %38 : vector<16x128xbf16> to vector<16x128xf32>
    %40 = arith.subf %15, %39 : vector<16x128xf32>
    %41 = arith.truncf %40 : vector<16x128xf32> to vector<16x128xbf16>
    %cst_23 = arith.constant dense<0.000000e+00> : vector<16x384xf32>
    %42 = tpu.matmul %38, %37, %cst_23 {dimension_numbers = #tpu.dot_dimension_numbers<[1], [0], [0], [1], [0, 0, 1, 1], [], []>} : vector<16x128xbf16>, vector<128x384xbf16>, vector<16x384xf32> -> vector<16x384xf32>
    %cst_24 = arith.constant dense<0.000000e+00> : vector<16x384xf32>
    %43 = tpu.matmul %41, %37, %cst_24 {dimension_numbers = #tpu.dot_dimension_numbers<[1], [0], [0], [1], [0, 0, 1, 1], [], []>} : vector<16x128xbf16>, vector<128x384xbf16>, vector<16x384xf32> -> vector<16x384xf32>
    %44 = arith.addf %42, %43 : vector<16x384xf32>
    %c1_25 = arith.constant 1 : index
    %c0_26 = arith.constant 0 : index
    %c0_27 = arith.constant 0 : index
    %45 = vector.load %arg2[%c1_25, %c0_26, %c0_27] : memref<3x128x384xbf16, #tpu.memory_space<vmem>>, vector<1x128x384xbf16>
    %46 = vector.shape_cast %45 : vector<1x128x384xbf16> to vector<128x384xbf16>
    %47 = arith.truncf %25 : vector<16x128xf32> to vector<16x128xbf16>
    %48 = arith.extf %47 : vector<16x128xbf16> to vector<16x128xf32>
    %49 = arith.subf %25, %48 : vector<16x128xf32>
    %50 = arith.truncf %49 : vector<16x128xf32> to vector<16x128xbf16>
    %cst_28 = arith.constant dense<0.000000e+00> : vector<16x384xf32>
    %51 = tpu.matmul %47, %46, %cst_28 {dimension_numbers = #tpu.dot_dimension_numbers<[1], [0], [0], [1], [0, 0, 1, 1], [], []>} : vector<16x128xbf16>, vector<128x384xbf16>, vector<16x384xf32> -> vector<16x384xf32>
    %cst_29 = arith.constant dense<0.000000e+00> : vector<16x384xf32>
    %52 = tpu.matmul %50, %46, %cst_29 {dimension_numbers = #tpu.dot_dimension_numbers<[1], [0], [0], [1], [0, 0, 1, 1], [], []>} : vector<16x128xbf16>, vector<128x384xbf16>, vector<16x384xf32> -> vector<16x384xf32>
    %53 = arith.addf %51, %52 : vector<16x384xf32>
    %54 = arith.addf %44, %53 : vector<16x384xf32>
    %c2_30 = arith.constant 2 : index
    %c0_31 = arith.constant 0 : index
    %c0_32 = arith.constant 0 : index
    %55 = vector.load %arg2[%c2_30, %c0_31, %c0_32] : memref<3x128x384xbf16, #tpu.memory_space<vmem>>, vector<1x128x384xbf16>
    %56 = vector.shape_cast %55 : vector<1x128x384xbf16> to vector<128x384xbf16>
    %57 = arith.truncf %35 : vector<16x128xf32> to vector<16x128xbf16>
    %58 = arith.extf %57 : vector<16x128xbf16> to vector<16x128xf32>
    %59 = arith.subf %35, %58 : vector<16x128xf32>
    %60 = arith.truncf %59 : vector<16x128xf32> to vector<16x128xbf16>
    %cst_33 = arith.constant dense<0.000000e+00> : vector<16x384xf32>
    %61 = tpu.matmul %57, %56, %cst_33 {dimension_numbers = #tpu.dot_dimension_numbers<[1], [0], [0], [1], [0, 0, 1, 1], [], []>} : vector<16x128xbf16>, vector<128x384xbf16>, vector<16x384xf32> -> vector<16x384xf32>
    %cst_34 = arith.constant dense<0.000000e+00> : vector<16x384xf32>
    %62 = tpu.matmul %60, %56, %cst_34 {dimension_numbers = #tpu.dot_dimension_numbers<[1], [0], [0], [1], [0, 0, 1, 1], [], []>} : vector<16x128xbf16>, vector<128x384xbf16>, vector<16x384xf32> -> vector<16x384xf32>
    %63 = arith.addf %61, %62 : vector<16x384xf32>
    %64 = arith.addf %54, %63 : vector<16x384xf32>
    %c0_35 = arith.constant 0 : index
    %c0_36 = arith.constant 0 : index
    %c0_37 = arith.constant 0 : index
    %65 = vector.load %arg4[%c0_35, %c0_36, %c0_37] : memref<1x16x768xf32, #tpu.memory_space<vmem>>, vector<1x16x384xf32>
    %66 = vector.shape_cast %65 : vector<1x16x384xf32> to vector<16x384xf32>
    %67 = vector.shape_cast %64 : vector<16x384xf32> to vector<1x16x384xf32>
    tpu.vector_store %arg4[%c0_35, %c0_36, %c0_37], %67 {strides = array<i32>} : memref<1x16x768xf32, #tpu.memory_space<vmem>>, vector<1x16x384xf32>,
    %c0_38 = arith.constant 0 : index
    %c0_39 = arith.constant 0 : index
    %c0_40 = arith.constant 0 : index
    %c128 = arith.constant 128 : index
    %68 = vector.load %arg3[%c0_38, %c0_39, %c0_40, %c128] : memref<1x3x16x256xf32, #tpu.memory_space<vmem>>, vector<1x1x16x128xf32>
    %69 = vector.shape_cast %68 : vector<1x1x16x128xf32> to vector<16x128xf32>
    %c0_41 = arith.constant 0 : index
    %c1_42 = arith.constant 1 : index
    %c0_43 = arith.constant 0 : index
    %c128_44 = arith.constant 128 : index
    %70 = vector.load %arg3[%c0_41, %c1_42, %c0_43, %c128_44] : memref<1x3x16x256xf32, #tpu.memory_space<vmem>>, vector<1x1x16x128xf32>
    %71 = vector.shape_cast %70 : vector<1x1x16x128xf32> to vector<16x128xf32>
    %c0_45 = arith.constant 0 : index
    %c2_46 = arith.constant 2 : index
    %c0_47 = arith.constant 0 : index
    %c128_48 = arith.constant 128 : index
    %72 = vector.load %arg3[%c0_45, %c2_46, %c0_47, %c128_48] : memref<1x3x16x256xf32, #tpu.memory_space<vmem>>, vector<1x1x16x128xf32>
    %73 = vector.shape_cast %72 : vector<1x1x16x128xf32> to vector<16x128xf32>
    %cst_49 = arith.constant 2.990000e-01 : f32
    %74 = vector.broadcast %cst_49 : f32 to vector<16x128xf32>
    %75 = arith.mulf %74, %69 : vector<16x128xf32>
    %cst_50 = arith.constant 5.870000e-01 : f32
    %76 = vector.broadcast %cst_50 : f32 to vector<16x128xf32>
    %77 = arith.mulf %76, %71 : vector<16x128xf32>
    %78 = arith.addf %75, %77 : vector<16x128xf32>
    %cst_51 = arith.constant 1.140000e-01 : f32
    %79 = vector.broadcast %cst_51 : f32 to vector<16x128xf32>
    %80 = arith.mulf %79, %73 : vector<16x128xf32>
    %81 = arith.addf %78, %80 : vector<16x128xf32>
    %cst_52 = arith.constant 0.000000e+00 : f32
    %82 = vector.broadcast %cst_52 : f32 to vector<16x128xf32>
    %83 = arith.addf %81, %82 : vector<16x128xf32>
    %cst_53 = arith.constant -1.687360e-01 : f32
    %84 = vector.broadcast %cst_53 : f32 to vector<16x128xf32>
    %85 = arith.mulf %84, %69 : vector<16x128xf32>
    %cst_54 = arith.constant -3.312640e-01 : f32
    %86 = vector.broadcast %cst_54 : f32 to vector<16x128xf32>
    %87 = arith.mulf %86, %71 : vector<16x128xf32>
    %88 = arith.addf %85, %87 : vector<16x128xf32>
    %cst_55 = arith.constant 5.000000e-01 : f32
    %89 = vector.broadcast %cst_55 : f32 to vector<16x128xf32>
    %90 = arith.mulf %89, %73 : vector<16x128xf32>
    %91 = arith.addf %88, %90 : vector<16x128xf32>
    %cst_56 = arith.constant 1.280000e+02 : f32
    %92 = vector.broadcast %cst_56 : f32 to vector<16x128xf32>
    %93 = arith.addf %91, %92 : vector<16x128xf32>
    %cst_57 = arith.constant 5.000000e-01 : f32
    %94 = vector.broadcast %cst_57 : f32 to vector<16x128xf32>
    %95 = arith.mulf %94, %69 : vector<16x128xf32>
    %cst_58 = arith.constant -4.186880e-01 : f32
    %96 = vector.broadcast %cst_58 : f32 to vector<16x128xf32>
    %97 = arith.mulf %96, %71 : vector<16x128xf32>
    %98 = arith.addf %95, %97 : vector<16x128xf32>
    %cst_59 = arith.constant -8.131200e-02 : f32
    %99 = vector.broadcast %cst_59 : f32 to vector<16x128xf32>
    %100 = arith.mulf %99, %73 : vector<16x128xf32>
    %101 = arith.addf %98, %100 : vector<16x128xf32>
    %cst_60 = arith.constant 1.280000e+02 : f32
    %102 = vector.broadcast %cst_60 : f32 to vector<16x128xf32>
    %103 = arith.addf %101, %102 : vector<16x128xf32>
    %c0_61 = arith.constant 0 : index
    %c0_62 = arith.constant 0 : index
    %c0_63 = arith.constant 0 : index
    %104 = vector.load %arg2[%c0_61, %c0_62, %c0_63] : memref<3x128x384xbf16, #tpu.memory_space<vmem>>, vector<1x128x384xbf16>
    %105 = vector.shape_cast %104 : vector<1x128x384xbf16> to vector<128x384xbf16>
    %106 = arith.truncf %83 : vector<16x128xf32> to vector<16x128xbf16>
    %107 = arith.extf %106 : vector<16x128xbf16> to vector<16x128xf32>
    %108 = arith.subf %83, %107 : vector<16x128xf32>
    %109 = arith.truncf %108 : vector<16x128xf32> to vector<16x128xbf16>
    %cst_64 = arith.constant dense<0.000000e+00> : vector<16x384xf32>
    %110 = tpu.matmul %106, %105, %cst_64 {dimension_numbers = #tpu.dot_dimension_numbers<[1], [0], [0], [1], [0, 0, 1, 1], [], []>} : vector<16x128xbf16>, vector<128x384xbf16>, vector<16x384xf32> -> vector<16x384xf32>
    %cst_65 = arith.constant dense<0.000000e+00> : vector<16x384xf32>
    %111 = tpu.matmul %109, %105, %cst_65 {dimension_numbers = #tpu.dot_dimension_numbers<[1], [0], [0], [1], [0, 0, 1, 1], [], []>} : vector<16x128xbf16>, vector<128x384xbf16>, vector<16x384xf32> -> vector<16x384xf32>
    %112 = arith.addf %110, %111 : vector<16x384xf32>
    %c1_66 = arith.constant 1 : index
    %c0_67 = arith.constant 0 : index
    %c0_68 = arith.constant 0 : index
    %113 = vector.load %arg2[%c1_66, %c0_67, %c0_68] : memref<3x128x384xbf16, #tpu.memory_space<vmem>>, vector<1x128x384xbf16>
    %114 = vector.shape_cast %113 : vector<1x128x384xbf16> to vector<128x384xbf16>
    %115 = arith.truncf %93 : vector<16x128xf32> to vector<16x128xbf16>
    %116 = arith.extf %115 : vector<16x128xbf16> to vector<16x128xf32>
    %117 = arith.subf %93, %116 : vector<16x128xf32>
    %118 = arith.truncf %117 : vector<16x128xf32> to vector<16x128xbf16>
    %cst_69 = arith.constant dense<0.000000e+00> : vector<16x384xf32>
    %119 = tpu.matmul %115, %114, %cst_69 {dimension_numbers = #tpu.dot_dimension_numbers<[1], [0], [0], [1], [0, 0, 1, 1], [], []>} : vector<16x128xbf16>, vector<128x384xbf16>, vector<16x384xf32> -> vector<16x384xf32>
    %cst_70 = arith.constant dense<0.000000e+00> : vector<16x384xf32>
    %120 = tpu.matmul %118, %114, %cst_70 {dimension_numbers = #tpu.dot_dimension_numbers<[1], [0], [0], [1], [0, 0, 1, 1], [], []>} : vector<16x128xbf16>, vector<128x384xbf16>, vector<16x384xf32> -> vector<16x384xf32>
    %121 = arith.addf %119, %120 : vector<16x384xf32>
    %122 = arith.addf %112, %121 : vector<16x384xf32>
    %c2_71 = arith.constant 2 : index
    %c0_72 = arith.constant 0 : index
    %c0_73 = arith.constant 0 : index
    %123 = vector.load %arg2[%c2_71, %c0_72, %c0_73] : memref<3x128x384xbf16, #tpu.memory_space<vmem>>, vector<1x128x384xbf16>
    %124 = vector.shape_cast %123 : vector<1x128x384xbf16> to vector<128x384xbf16>
    %125 = arith.truncf %103 : vector<16x128xf32> to vector<16x128xbf16>
    %126 = arith.extf %125 : vector<16x128xbf16> to vector<16x128xf32>
    %127 = arith.subf %103, %126 : vector<16x128xf32>
    %128 = arith.truncf %127 : vector<16x128xf32> to vector<16x128xbf16>
    %cst_74 = arith.constant dense<0.000000e+00> : vector<16x384xf32>
    %129 = tpu.matmul %125, %124, %cst_74 {dimension_numbers = #tpu.dot_dimension_numbers<[1], [0], [0], [1], [0, 0, 1, 1], [], []>} : vector<16x128xbf16>, vector<128x384xbf16>, vector<16x384xf32> -> vector<16x384xf32>
    %cst_75 = arith.constant dense<0.000000e+00> : vector<16x384xf32>
    %130 = tpu.matmul %128, %124, %cst_75 {dimension_numbers = #tpu.dot_dimension_numbers<[1], [0], [0], [1], [0, 0, 1, 1], [], []>} : vector<16x128xbf16>, vector<128x384xbf16>, vector<16x384xf32> -> vector<16x384xf32>
    %131 = arith.addf %129, %130 : vector<16x384xf32>
    %132 = arith.addf %122, %131 : vector<16x384xf32>
    %c0_76 = arith.constant 0 : index
    %c0_77 = arith.constant 0 : index
    %c384 = arith.constant 384 : index
    %133 = vector.load %arg4[%c0_76, %c0_77, %c384] : memref<1x16x768xf32, #tpu.memory_space<vmem>>, vector<1x16x384xf32>
    %134 = vector.shape_cast %133 : vector<1x16x384xf32> to vector<16x384xf32>
    %135 = vector.shape_cast %132 : vector<16x384xf32> to vector<1x16x384xf32>
    tpu.vector_store %arg4[%c0_76, %c0_77, %c384], %135 {strides = array<i32>} : memref<1x16x768xf32, #tpu.memory_space<vmem>>, vector<1x16x384xf32>,
    return
  }
  func.func @transform_0(%arg0: i32, %arg1: i32) -> (i32, i32, i32) {
    %c0_i32 = arith.constant 0 : i32
    %c0_i32_0 = arith.constant 0 : i32
    %c0_i32_1 = arith.constant 0 : i32
    %c0_i32_2 = arith.constant 0 : i32
    return %c0_i32, %c0_i32_0, %c0_i32_1 : i32, i32, i32
  }
  func.func @transform_1(%arg0: i32, %arg1: i32) -> (i32, i32, i32, i32) {
    %c0_i32 = arith.constant 0 : i32
    %c0_i32_0 = arith.constant 0 : i32
    %c0_i32_1 = arith.constant 0 : i32
    return %arg0, %c0_i32, %arg1, %c0_i32_0 : i32, i32, i32, i32
  }
  func.func @transform_2(%arg0: i32, %arg1: i32) -> (i32, i32, i32) {
    %c0_i32 = arith.constant 0 : i32
    %c0_i32_0 = arith.constant 0 : i32
    return %arg0, %arg1, %c0_i32 : i32, i32, i32
  }
}

</mosaic_0001>

<bundles_post_ra>
// kernel: tpu_custom_call.1
= control target key start
LH: loop header
LB: loop body
LE: loop exit
PB: predicated region body
PF: predicated region fallthrough
CT: control target
= control target key end

     0   :  { %s4274_s0 = inlined_call_operand.hbm [shape: bf16[3,128,384], index: 0, kind: input, shape index: {}]   ;;  %s4275_s1 = inlined_call_operand.hbm [shape: f32[2,3,64,256], index: 1, kind: input, shape index: {}]   ;;  %s4276_s2 = inlined_call_operand.hbm [shape: f32[2,64,768], index: 2, kind: output, shape index: {}]  }
   0x1   :  { %4290 = sst [smem:[#allocation18_spill]] %s4274_s0 }
   0x2   :  { %7 = vsyncpa [#allocation3], 0 }
   0x3   :  { %8 = vsyncpa [#allocation6], 0 }
   0x4   :  { %10 = vsyncpa [#allocation6 + $0x1], 0 }
   0x5   :  { %11 = vsyncpa [#allocation4], 0 }
   0x6   :  { %13 = vsyncpa [#allocation4 + $0x1], 0  ;;  %s3472_s9 = smov 0   ;;  %s3474_s10 = smov 0  }
   0x7   :  { %s3476_s11 = smov 0   ;;  %s3478_s12 = smov 0  }
   0x8   :  { %s3480_s13 = smov 0   ;;  %s3482_s14 = smov 0  }
   0x9   :  { %s3484_s15 = smov 0   ;;  %s3486_s16 = smov 0  }
   0xa LB: > { %4291 = sst [smem:[#allocation14_spill]] %s3436_s15  ;;  %s2471_s17 = sadd.s32 4294967295, %s3440_s16   ;;  %s3440_s16 = sphi %s3486_s16, %s19_s16   ;;  %s3436_s15 = sphi %s3484_s15, %s4313_s15   ;;  %s3432_s14 = sphi %s3482_s14, %s4318_s14   ;;  %s3428_s13 = sphi %s3480_s13, %s4311_s13   ;;  %s3424_s12 = sphi %s3478_s12, %s4317_s12   ;;  %s3420_s11 = sphi %s3476_s11, %s4316_s11   ;;  %s3416_s10 = sphi %s3474_s10, %s4315_s10   ;;  %s3412_s9 = sphi %s3472_s9, %s4314_s9  }
   0xb   : > { %s2472_s18 = sadd.s32 4294967294, %s3440_s16   ;;  %s28_s19 = sadd.s32 1, %s3432_s14 }
   0xc   : > { %s31_s20 = sadd.s32 1, %s3436_s15  ;;  %p29_p0 = scmp.ge.s32.totalorder %s28_s19, 4 }
   0xd   : > { %s61_s21 = sadd.s32 1, %s3420_s11  ;;  %p68_p1 = scmp.ne.s32.totalorder %s3420_s11, %s3416_s10 }
   0xe   : > { %p69_p2 = scmp.eq.s32.totalorder %s3440_s16, 0  ;;  %s4320_s19 = smov (%p29_p0, %s28_s19), 0 }
   0xf   : > { %4292 = sst [smem:[#allocation15_spill]] %s4320_s19  ;;  %s4322_s20 = smov (!%p29_p0, %s31_s20), %s3436_s15 }
  0x10   : > { %s57_s22 = ssub.s32 %s3432_s14, %s4320_s19  ;;  %p3525_p3 = por %p69_p2, %p68_p1 }
  0x11   : > { %p33_p4 = scmp.ge.s32.totalorder %s4322_s20, 2  ;;  %p74_p5 = scmp.ne.s32.totalorder %s3416_s10, %s3412_s9 }
  0x12   : > { %s4293_s23 = scalar_select %p3525_p3, 1, 0 }
  0x13   : > { %p3531_p6 = scmp.eq.s32.totalorder %s2471_s17, 0  ;;  %p100_p7 = scmp.eq.s32.totalorder %s2471_s17, 7 }
  0x14   : > { %s4324_s20 = smov (%p33_p4, %s4322_s20), 0  ;;  %p106_p10 = scmp.eq.s32.totalorder %s2472_s18, 7 }
  0x15   : > { %s4294_s24 = scalar_select %p3531_p6, 1, 0 }
  0x16   : > { %4295 = sst [smem:[#allocation16_spill]] %s4324_s20  ;;  %p3539_p8 = por %p3531_p6, %p74_p5 }
  0x17   : > { %p3543_p9 = por %p100_p7, %p68_p1  ;;  %s56_s27 = ssub.s32 %s3436_s15, %s4324_s20 }
  0x18   : > { %s4296_s25 = scalar_select %p3539_p8, 1, 0 }
  0x19   : > { %s4297_s26 = scalar_select %p3543_p9, 1, 0 }
  0x1a   : > { %s58_s28 = sor.u32 %s57_s22, %s56_s27  ;;  %p2473_p11 = scmp.ge.s32.totalorder %s3440_s16, 1 }
  0x1b   : > { %p59_p12 = scmp.eq.s32.totalorder %s58_s28, 0  ;;  %p3550_p13 = por %p106_p10, %p74_p5 }
  0x1c   : > { %p113_p0 = scmp.lt.s32.totalorder %s3440_s16, 9  ;;  %s3442_s4 = smov [#allocation2]  }
  0x1d   : > { %s4298_s29 = scalar_select %p3550_p13, 1, 0 }
  0x1e   : > { %s3556_s30 = scalar_select %p59_p12, %s3420_s11, %s61_s21  }
  0x1f   : > { %p3558_p2 = pnand %p2473_p11, %p113_p0  ;;  %s125_s5 = sshll.u32 %s3442_s4, 4  ;;  %s126_s5 = int_to_ptr.vmem [resolvable:$true] %s125_s5 }
  0x20   : > { %s4301_s0 = sld [smem:[#allocation18_spill]] }
  0x21   : > { %s4299_s3 = scalar_select %p3558_p2, 1, 0 }
  0x22   : > { %p3089_p1 = pneg %p3558_p2 }
  0x24   : > { %p3566_p4 = pnand %p3089_p1, %p3531_p6 }
  0x26   : > { %s3310_s17 = scalar_lea.hbm %s4301_s0, 9216  ;;  %p3312_p7 = pneg %p3566_p4 }
  0x27   : > { %p3311_p5 = scmp.ne.s32.totalorder %s4301_s0, %s3310_s17  ;;  %p3317_p12 = scmp.lt.u32.totalorder %s3310_s17, %s4301_s0 }
  0x29   : > { %p3313_p10 = pnand %p3312_p7, %p3311_p5 }
  0x2b   : > { %p3314_p11 = pneg %p3313_p10 }
  0x2d   : > { %p3319_p0 = pnand %p3317_p12, %p3314_p11 }
  0x2f   : > { %3322 = shalt.err (!%p3319_p0)
}
  0x30   : > { %s3323_s28 = scalar_lea.vmem %s126_s5, 9216  ;;  %p3331_p8 = scmp.lt.s32.totalorder %s126_s5, %s126_s5 }
  0x31   : > { %p3324_p1 = scmp.ne.s32.totalorder %s126_s5, %s3323_s28  ;;  %p3332_p6 = scmp.lt.s32.totalorder %s3323_s28, %s3323_s28 }
  0x33   : > { %p3326_p13 = pnand %p3324_p1, %p3312_p7  ;;  %p3333_p2 = por %p3332_p6, %p3331_p8 }
  0x35   : > { %p3327_p9 = pneg %p3326_p13 }
  0x37   : > { %p3334_p3 = pnand %p3333_p2, %p3327_p9 }
  0x39   : > { %3337 = shalt.err (!%p3334_p3)
}
  0x3a   : > { %s3443_s4 = smov 192   ;;  %s3444_s7 = smov 12  }
  0x3b   : > { %3092 = dma.hbm_to_vmem [thread:$0]  (!%p3566_p4), %s4301_s0, 9216, %s126_s5, [#allocation3], %s3443_s4, %s3443_s4, %s3444_s7  }
  0x3c   : > { %p2475_p5 = scmp.ge.s32.totalorder %s3440_s16, 8 }
  0x3e   : > { %135 = sbr.rel (%p2475_p5) target bundleno = 86 (0x56), region = 20 }
  0x45   : > { %s139_s17 = sand.u32 1, %s3420_s11   ;;  %s2640_s22 = sshll.u32 %s3432_s14, 2 }
  0x46   : > { %s3069_s21 = smul.u32 96, %s139_s17  ;;  %s3445_s27 = smov 2048  }
  0x47   : > { %s3070_s6 = smul.u32 48, %s3436_s15  ;;  %p4302_p3 = scmp.ne.s32.totalorder %s4293_s23, 0 }
  0x48   : > { %s143_s28 = scalar_lea.vmem [#allocation5], %s3069_s21  ;;  %s3446_s8 = smov 512  }
  0x49   : > { %3077 = sst [smem:[#allocation9]] (%p4302_p3), %s3445_s27  ;;  %s150_s5 = sadd.s32 %s3070_s6, %s2640_s22 }
  0x4a   : > { %s165_s4 = sshll.u32 %s143_s28, 4  ;;  %3078 = sst [smem:[#allocation9 + $0x1]] (%p4302_p3), %s3446_s8  ;;  %s166_s4 = int_to_ptr.vmem [resolvable:$true] %s165_s4 }
  0x4b   : > { %s3076_s7 = scalar_select %p4302_p3, [#allocation0], [#allocation10] }
  0x4c   : > { %s3447_s0 = smov 2   ;;  %s2478_s20 = sshll.u32 %s150_s5, 7 }
  0x4d   : > { %s157_s18 = sld [smem:[%s3076_s7]]   ;;  %s3448_s19 = smov 256  }
  0x4e   : > { %3079 = sst [smem:[#allocation9 + $0x2]] (%p4302_p3), %s3447_s0  ;;  %s3449_s22 = smov 16  }
  0x4f   : > { %3080 = sst [smem:[#allocation9 + $0x3]] (%p4302_p3), %s3448_s19  ;;  %s152_s27 = scalar_lea.hbm %s4275_s1, %s2478_s20 }
  0x50   : > { %3081 = sst [smem:[#allocation9 + $0x4]] (%p4302_p3), %s3448_s19  ;;  %s140_s7 = scalar_lea.sflag [#allocation6], %s139_s17 }
  0x51   : > { %3082 = sst [smem:[#allocation9 + $0x5]] (%p4302_p3), %s3449_s22  ;;  %s3450_s15 = smov [#allocation8]  }
  0x53   : > { %s2479_s28 = sshll.u32 %s157_s18, 26 }
  0x54   : > { %s2480_s8 = sadd.s32 134217728, %s2479_s28 }
  0x55   : > { %3083 = dma.general (%p4302_p3), %s152_s27, 1536, %s166_s4, %s140_s7, %s3450_s15, [#allocation9], %s2480_s8, 0  }
  0x56 PF: > { %p4303_p6 = scmp.ne.s32.totalorder %s4299_s3, 0 }
  0x58   : > { %190 = sbr.rel (%p4303_p6) target bundleno = 719 (0x2cf), region = 28 }
  0x5f   : > { %p4304_p8 = scmp.ne.s32.totalorder %s4294_s24, 0 }
  0x61   : > { %3399 = dma.done.wait (%p4304_p8), [#allocation3], 9216  }
  0x62   : > { %3401 = vsyncadd (%p4304_p8), [#allocation3], 4294958080  ;;  %s3616_s0 = sand.u32 1, %s3416_s10   ;;  %p4305_p9 = scmp.ne.s32.totalorder %s4296_s25, 0 }
  0x63   : > { %s3071_s19 = smul.u32 96, %s3616_s0  ;;  %s197_s20 = scalar_lea.sflag [#allocation6], %s3616_s0 }
  0x65   : > { %s3622_s15 = scalar_lea.vmem [#allocation5], %s3071_s19 }
  0x66   : > { %3403 = dma.done.wait (%p4305_p9), %s197_s20, 1536  }
  0x67   : > { %3405 = vsyncadd (%p4305_p9), %s197_s20, 4294965760  ;;  %v3451_v0 = vmov 0.0   ;;  %vm3452_vm0 = vmmov 0   ;;  %v4286_v1 = vmov 0   ;;  %v3632_v2 = vld [vmem:[#allocation2 + $0x4] ss:$12 sps:$4 sm:$0xff]  }
  0x68   : > { %2749 = vmatprep.subr.bf16.mxu1 %v3451_v0  ;;  %2765 = vmatprep.mubr.msk.bf16.mxu1 %vm3452_vm0, %v3451_v0  ;;  %v3634_v3 = vld [vmem:[#allocation2 + $0x8] ss:$12 sps:$4 sm:$0xff]   ;;  %v3637_v4 = vld [vmem:[#allocation2] ss:$12 sps:$4 sm:$0xff]   ;;  %v3646_v7 = vld [vmem:[#allocation2 + $0x18] ss:$12 sps:$4 sm:$0xff]  }
  0x69   : > { %466 = vmatprep.mubr.bf16.mxu0 %v4286_v1  ;;  %434 = vmatprep.subr.bf16.mxu0 %v3632_v2  ;;  %v3640_v5 = vld [vmem:[#allocation2 + $0x1c] ss:$12 sps:$4 sm:$0xff]   ;;  %v3644_v6 = vld [vmem:[#allocation2 + $0x20] ss:$12 sps:$4 sm:$0xff]   ;;  %v3652_v9 = vld [vmem:[#allocation2 + $0x38] ss:$12 sps:$4 sm:$0xff]  }
  0x6a   : > { %2750 = vmatpush3.bf16.msra.mxu1 %v3634_v3  ;;  %435 = vmatpush1.bf16.msra.mxu0 %v3637_v4  ;;  %v3649_v8 = vld [vmem:[#allocation2 + $0x34] ss:$12 sps:$4 sm:$0xff]   ;;  %v3656_v10 = vld [vmem:[#allocation2 + $0x30] ss:$12 sps:$4 sm:$0xff]   ;;  %v3659_v11 = vld [vmem:[#allocation2 + $0x4c] ss:$12 sps:$4 sm:$0xff]  }
  0x6b   : > { %2751 = vmatprep.subr.bf16.mxu1 %v3451_v0  ;;  %436 = vmatprep.subr.bf16.mxu0 %v3640_v5  ;;  %v3662_v12 = vld [vmem:[#allocation2 + $0x50] ss:$12 sps:$4 sm:$0xff]   ;;  %v3666_v13 = vld [vmem:[#allocation2 + $0x48] ss:$12 sps:$4 sm:$0xff]   ;;  %v3676_v16 = vld [vmem:[#allocation2 + $0x60] ss:$12 sps:$4 sm:$0xff]  }
  0x6c   : > { %v3669_v14 = vld [vmem:[#allocation2 + $0x64] ss:$12 sps:$4 sm:$0xff]   ;;  %v3672_v15 = vld [vmem:[#allocation2 + $0x68] ss:$12 sps:$4 sm:$0xff]   ;;  %v3681_v18 = vld [vmem:[#allocation2 + $0x80] ss:$12 sps:$4 sm:$0xff]  }
  0x6d   : > { %v3679_v17 = vld [vmem:[#allocation2 + $0x7c] ss:$12 sps:$4 sm:$0xff]   ;;  %v3683_v19 = vld [vmem:[#allocation2 + $0x78] ss:$12 sps:$4 sm:$0xff]   ;;  %v3689_v21 = vld [vmem:[#allocation2 + $0x94] ss:$12 sps:$4 sm:$0xff]  }
  0x6e   : > { %2752 = vmatpush3.bf16.msra.mxu1 %v3644_v6  ;;  %437 = vmatpush1.bf16.msra.mxu0 %v3646_v7  ;;  %v3686_v20 = vld [vmem:[%s3622_s15] sm:$0xff]  ;;  %v3692_v22 = vld [vmem:[%s3622_s15 + $0x10] sm:$0xff]  ;;  %v3723_v38 = vld [vmem:[#allocation2 + $0xac] ss:$12 sps:$4 sm:$0xff]   ;;  %s4198_s23 = scalar_lea.vmem [#allocation7], %s3071_s19  ;;  %s3072_s24 = smul.u32 12, %s3424_s12 }
  0x6f   : > { %2753 = vmatprep.subr.bf16.mxu1 %v3451_v0  ;;  %438 = vmatprep.subr.bf16.mxu0 %v3649_v8  ;;  %v3695_v23 = vld [vmem:[%s3622_s15 + $0x20] sm:$0xff]  ;;  %v3698_v24 = vld [vmem:[%s3622_s15 + $0x30] sm:$0xff]  ;;  %v232_v25 = vmul.f32 0.299, %v3686_v20  ;;  %v233_v28 = vmul.f32 0.299, %v3692_v22 }
  0x70   : > { %v3704_v26 = vld [vmem:[%s3622_s15 + $0x40] sm:$0xff]  ;;  %v3707_v27 = vld [vmem:[%s3622_s15 + $0x50] sm:$0xff]  ;;  %v234_v29 = vmul.f32 0.587, %v3695_v23  ;;  %v235_v30 = vmul.f32 0.587, %v3698_v24 }
  0x71   : > { %v238_v31 = vmul.f32 0.114, %v3704_v26  ;;  %v239_v32 = vmul.f32 0.114, %v3707_v27  ;;  %v3716_v34 = vld [vmem:[#allocation2 + $0x98] ss:$12 sps:$4 sm:$0xff]  }
  0x72   : > { %2754 = vmatpush3.bf16.msra.mxu1 %v3652_v9  ;;  %439 = vmatpush1.bf16.msra.mxu0 %v3656_v10  ;;  %v236_v33 = vadd.f32 %v234_v29, %v232_v25  ;;  %v237_v35 = vadd.f32 %v235_v30, %v233_v28  ;;  %v3720_v36 = vld [vmem:[#allocation2 + $0x90] ss:$12 sps:$4 sm:$0xff]   ;;  %v3732_v42 = vld [vmem:[#allocation2 + $0xa8] ss:$12 sps:$4 sm:$0xff]   ;;  %v256_v48 = vmul.f32 0.5, %v3686_v20  ;;  %v257_v49 = vmul.f32 0.5, %v3692_v22 }
  0x73   : > { %2755 = vmatprep.subr.bf16.mxu1 %v3451_v0  ;;  %440 = vmatprep.subr.bf16.mxu0 %v3659_v11  ;;  %v3726_v40 = vld [vmem:[#allocation2 + $0xb0] ss:$12 sps:$4 sm:$0xff]   ;;  %v258_v50 = vmul.f32 -0.418688, %v3695_v23  ;;  %v259_v51 = vmul.f32 -0.418688, %v3698_v24 }
  0x74   : > { %v240_v37 = vadd.f32 %v238_v31, %v236_v33  ;;  %v241_v39 = vadd.f32 %v239_v32, %v237_v35  ;;  %v262_v54 = vmul.f32 -0.081312, %v3704_v26  ;;  %v263_v55 = vmul.f32 -0.081312, %v3707_v27  ;;  %v3776_v62 = vld [vmem:[#allocation2 + $0xc4] ss:$12 sps:$4 sm:$0xff]  }
  0x75   : > { %v260_v52 = vadd.f32 %v258_v50, %v256_v48  ;;  %v261_v53 = vadd.f32 %v259_v51, %v257_v49  ;;  %v244_v59 = vmul.f32 -0.168736, %v3686_v20  ;;  %v245_v61 = vmul.f32 -0.168736, %v3692_v22  ;;  %v3799_v25 = vld [vmem:[#allocation2 + $0xd8] ss:$12 sps:$4 sm:$0xff]  }
  0x76   : > { %2756 = vmatpush3.bf16.msra.mxu1 %v3662_v12  ;;  %441 = vmatpush1.bf16.msra.mxu0 %v3666_v13  ;;  %v3728_v41 = vpack.c.bf16 %v241_v39, %v240_v37  ;;  %v246_v63 = vmul.f32 -0.331264, %v3695_v23  ;;  %v3801_v28 = vld [vmem:[#allocation2 + $0xe0] ss:$12 sps:$4 sm:$0xff]   ;;  %v247_v29 = vmul.f32 -0.331264, %v3698_v24 }
  0x77   : > { %2757 = vmatprep.subr.bf16.mxu1 %v3451_v0  ;;  %442 = vmatprep.subr.bf16.mxu0 %v3669_v14  ;;  %v264_v56 = vadd.f32 %v262_v54, %v260_v52  ;;  %v265_v57 = vadd.f32 %v263_v55, %v261_v53  ;;  %v3806_v30 = vld [vmem:[#allocation2 + $0xf4] ss:$12 sps:$4 sm:$0xff]   ;;  %v250_v31 = vmul.f32 0.5, %v3704_v26  ;;  %v251_v32 = vmul.f32 0.5, %v3707_v27  ;;  %v3814_v33 = vld [vmem:[#allocation2 + $0xf0] ss:$12 sps:$4 sm:$0xff]  }
  0x78   : > { %v301_v43 = vunpack.c.l.bf16 %v3728_v41  ;;  %v302_v44 = vunpack.c.h.bf16 %v3728_v41  ;;  %v3816_v24 = vld [vmem:[#allocation2 + $0xf8] ss:$12 sps:$4 sm:$0xff]   ;;  %v249_v35 = vadd.f32 %v247_v29, %v245_v61  ;;  %v3233_v50 = vld [vmem:[#allocation2 + $0x140] ss:$12 sps:$4 sm:$0xff]   ;;  %v3854_v54 = vld [vmem:[#allocation2 + $0x150] ss:$12 sps:$4 sm:$0xff]  }
  0x79   : > { %v266_v58 = vadd.f32 128.0, %v264_v56  ;;  %v267_v60 = vadd.f32 128.0, %v265_v57  ;;  %v3825_v26 = vld [vmem:[#allocation2 + $0x10c] ss:$12 sps:$4 sm:$0xff]   ;;  %v3849_v51 = vld [vmem:[#allocation2 + $0x154] ss:$12 sps:$4 sm:$0xff]  }
  0x7a   : > { %2758 = vmatpush3.bf16.msra.mxu1 %v3672_v15  ;;  %443 = vmatpush1.bf16.msra.mxu0 %v3676_v16  ;;  %v303_v45 = vsub.f32 %v240_v37, %v301_v43  ;;  %v304_v46 = vsub.f32 %v241_v39, %v302_v44  ;;  %v253_v37 = vadd.f32 %v251_v32, %v249_v35  ;;  %v3829_v39 = vld [vmem:[#allocation2 + $0x108] ss:$12 sps:$4 sm:$0xff]   ;;  %v3845_v49 = vld [vmem:[#allocation2 + $0x138] ss:$12 sps:$4 sm:$0xff]   ;;  %v3917_v29 = vld [vmem:[#allocation2 + $0x1b0] ss:$12 sps:$4 sm:$0xff]  }
  0x7b   : > { %2759 = vmatprep.subr.bf16.mxu1 %v3451_v0  ;;  %444 = vmatprep.subr.bf16.mxu0 %v3679_v17  ;;  %v3237_v55 = vld [vmem:[#allocation2 + $0x158] ss:$12 sps:$4 sm:$0xff]   ;;  %s3073_s25 = smul.u32 48, %s3428_s13  ;;  %s2369_s5 = sshll.u32 %s4198_s23, 4  ;;  %s4216_s5 = int_to_ptr.vmem [resolvable:$true] %s2369_s5 }
  0x7c   : > { %v305_v47 = vpack.c.bf16 %v304_v46, %v303_v45  ;;  %v255_v44 = vadd.f32 128.0, %v253_v37  ;;  %v3836_v45 = vld [vmem:[#allocation2 + $0x120] ss:$12 sps:$4 sm:$0xff]   ;;  %v3229_v46 = vld [vmem:[#allocation2 + $0x128] ss:$12 sps:$4 sm:$0xff]   ;;  %s2353_s12 = scalar_lea.sflag [#allocation4], %s3616_s0 }
  0x7d   : > { %v3858_v56 = vld [vmem:[#allocation2 + $0x16c] ss:$12 sps:$4 sm:$0xff]   ;;  %v3928_v35 = vld [vmem:[#allocation2 + $0x1e4] ss:$12 sps:$4 sm:$0xff]   ;;  %v3261_v37 = vld [vmem:[#allocation2 + $0x1e8] ss:$12 sps:$4 sm:$0xff]   ;;  %s2366_s3 = sadd.s32 %s3073_s25, %s3072_s24 }
  0x7e   : > { %2760 = vmatpush3.bf16.msra.mxu1 %v3681_v18  ;;  %445 = vmatpush1.bf16.msra.mxu0 %v3683_v19  ;;  %v3921_v32 = vld [vmem:[#allocation2 + $0x1cc] ss:$12 sps:$4 sm:$0xff]   ;;  %s2637_s17 = sshll.u32 %s2366_s3, 7  ;;  %s3338_s13 = scalar_lea.vmem %s4216_s5, 1536 }
  0x7f   : > { %2761 = vmatprep.subr.bf16.mxu1 %v3451_v0  ;;  %446 = vmatprep.subr.bf16.mxu0 %v3689_v21  ;;  %s4214_s22 = scalar_lea.hbm %s4276_s2, %s2637_s17  ;;  %p3339_p13 = scmp.ne.s32.totalorder %s4216_s5, %s3338_s13 }
  0x80   : > { %p4309_p2 = scmp.ne.s32.totalorder %s4297_s26, 0  ;;  %s3454_s21 = smov [#allocation7]  }
  0x81   : > { %s3342_s6 = sshll.u32 %s3454_s21, 4  ;;  %s3343_s6 = int_to_ptr.vmem [resolvable:$false] %s3342_s6 }
  0x82   : > { %2762 = vmatpush3.bf16.msra.mxu1 %v3716_v34  ;;  %447 = vmatpush1.bf16.msra.mxu0 %v3720_v36  ;;  %p3340_p4 = pnand %p3339_p13, %p4309_p2  ;;  %s3344_s27 = scalar_lea.vmem %s3343_s6, 3072 }
  0x83   : > { %2763 = vmatprep.subr.bf16.mxu1 %v3451_v0  ;;  %448 = vmatprep.subr.bf16.mxu0 %v3723_v38  ;;  %p3345_p10 = scmp.lt.s32.totalorder %s4216_s5, %s3343_s6  ;;  %p3346_p11 = scmp.lt.s32.totalorder %s3344_s27, %s3338_s13 }
  0x84   : > { %p3341_p7 = pneg %p3340_p4 }
  0x85   : > { %p3347_p12 = por %p3346_p11, %p3345_p10 }
  0x86   : > { %2764 = vmatpush3.bf16.msra.mxu1 %v3726_v40  ;;  %449 = vmatpush1.bf16.msra.mxu0 %v3732_v42 }
  0x87   : > { %2769 = vmatprep.subr.bf16.mxu1 %v3451_v0  ;;  %518 = vmatprep.subr.bf16.mxu0 %v3632_v2  ;;  %p3348_p0 = pnand %p3347_p12, %p3341_p7 }
  0x89   : > { %2766 = vmatmul.mubr.bf16.vlgmr.msra.gmra.mrb[0].mxu1 %v305_v47  ;;  %467 = vmatmul.mubr.bf16.vlgmr.msra.gmra.mrb[0].mxu0 %v305_v47  ;;  %v3840_v47 = vld [vmem:[#allocation2 + $0x13c] ss:$12 sps:$4 sm:$0xff]  }
  0x8a   : > { %2770 = vmatpush3.bf16.msra.mxu1 %v3634_v3  ;;  %519 = vmatpush1.bf16.msra.mxu0 %v3637_v4  ;;  %v3779_v3 = vpack.c.bf16 %v267_v60, %v266_v58 }
  0x8b   : > { %2771 = vmatprep.subr.bf16.mxu1 %v3451_v0  ;;  %520 = vmatprep.subr.bf16.mxu0 %v3640_v5 }
  0x8c   : > { %2785 = vmatprep.mubr.msk.bf16.mxu1 %vm3452_vm0, %v3451_v0  ;;  %550 = vmatprep.mubr.bf16.mxu0 %v4286_v1 }
  0x8e   : > { %2772 = vmatpush3.bf16.msra.mxu1 %v3644_v6  ;;  %521 = vmatpush1.bf16.msra.mxu0 %v3646_v7  ;;  %v977_v6 = vunpack.c.l.bf16 %v3779_v3 }
  0x8f   : > { %2773 = vmatprep.subr.bf16.mxu1 %v3451_v0  ;;  %522 = vmatprep.subr.bf16.mxu0 %v3649_v8 }
  0x90   : > { %v979_v20 = vsub.f32 %v266_v58, %v977_v6  ;;  %v3898_v6 = vld [vmem:[#allocation2 + $0x180] ss:$12 sps:$4 sm:$0xff]  }
  0x92   : > { %2774 = vmatpush3.bf16.msra.mxu1 %v3652_v9  ;;  %523 = vmatpush1.bf16.msra.mxu0 %v3656_v10  ;;  %v978_v9 = vunpack.c.h.bf16 %v3779_v3 }
  0x93   : > { %2775 = vmatprep.subr.bf16.mxu1 %v3451_v0  ;;  %524 = vmatprep.subr.bf16.mxu0 %v3659_v11 }
  0x94   : > { %v980_v22 = vsub.f32 %v267_v60, %v978_v9  ;;  %v3241_v60 = vld [vmem:[#allocation2 + $0x170] ss:$12 sps:$4 sm:$0xff]   ;;  %v3245_v9 = vld [vmem:[#allocation2 + $0x188] ss:$12 sps:$4 sm:$0xff]  }
  0x96   : > { %2776 = vmatpush3.bf16.msra.mxu1 %v3662_v12  ;;  %525 = vmatpush1.bf16.msra.mxu0 %v3666_v13  ;;  %v3787_v12 = vld [vmem:[#allocation2 + $0xc0] ss:$12 sps:$4 sm:$0xff]   ;;  %v3797_v23 = vpack.c.bf16 %v980_v22, %v979_v20  ;;  %v3907_v20 = vld [vmem:[#allocation2 + $0x198] ss:$12 sps:$4 sm:$0xff]  }
  0x97   : > { %2777 = vmatprep.subr.bf16.mxu1 %v3451_v0  ;;  %526 = vmatprep.subr.bf16.mxu0 %v3669_v14  ;;  %v3249_v22 = vld [vmem:[#allocation2 + $0x1a0] ss:$12 sps:$4 sm:$0xff]  }
  0x9a   : > { %2778 = vmatpush3.bf16.msra.mxu1 %v3672_v15  ;;  %527 = vmatpush1.bf16.msra.mxu0 %v3676_v16  ;;  %v3789_v15 = vld [vmem:[#allocation2 + $0xc8] ss:$12 sps:$4 sm:$0xff]  }
  0x9b   : > { %2779 = vmatprep.subr.bf16.mxu1 %v3451_v0  ;;  %528 = vmatprep.subr.bf16.mxu0 %v3679_v17 }
  0x9e   : > { %2780 = vmatpush3.bf16.msra.mxu1 %v3681_v18  ;;  %529 = vmatpush1.bf16.msra.mxu0 %v3683_v19  ;;  %v3791_v18 = vld [vmem:[#allocation2 + $0xdc] ss:$12 sps:$4 sm:$0xff]  }
  0x9f   : > { %2781 = vmatprep.subr.bf16.mxu1 %v3451_v0  ;;  %530 = vmatprep.subr.bf16.mxu0 %v3689_v21 }
  0xa2   : > { %2782 = vmatpush3.bf16.msra.mxu1 %v3716_v34  ;;  %531 = vmatpush1.bf16.msra.mxu0 %v3720_v36  ;;  %v248_v34 = vadd.f32 %v246_v63, %v244_v59  ;;  %v3861_v59 = vld [vmem:[#allocation2 + $0x168] ss:$12 sps:$4 sm:$0xff]   ;;  %v3895_v63 = vld [vmem:[#allocation2 + $0x184] ss:$12 sps:$4 sm:$0xff]  }
  0xa3   : > { %2783 = vmatprep.subr.bf16.mxu1 %v3451_v0  ;;  %532 = vmatprep.subr.bf16.mxu0 %v3723_v38 }
  0xa4   : > { %v252_v27 = vadd.f32 %v250_v31, %v248_v34  ;;  %v3253_v31 = vld [vmem:[#allocation2 + $0x1b8] ss:$12 sps:$4 sm:$0xff]   ;;  %v3257_v34 = vld [vmem:[#allocation2 + $0x1d0] ss:$12 sps:$4 sm:$0xff]  }
  0xa6   : > { %2784 = vmatpush3.bf16.msra.mxu1 %v3726_v40  ;;  %533 = vmatpush1.bf16.msra.mxu0 %v3732_v42  ;;  %v3225_v40 = vld [vmem:[#allocation2 + $0x110] ss:$12 sps:$4 sm:$0xff]   ;;  %v254_v43 = vadd.f32 128.0, %v252_v27  ;;  %v3931_v27 = vld [vmem:[#allocation2 + $0x1e0] ss:$12 sps:$4 sm:$0xff]  }
  0xa7   : > { %2789 = vmatprep.subr.bf16.mxu1 %v3451_v0  ;;  %769 = vmatprep.subr.bf16.mxu0 %v3776_v62 }
  0xa8   : > { %v3842_v48 = vpack.c.bf16 %v255_v44, %v254_v43 }
  0xa9   : > { %2786 = vmatmul.mubr.bf16.vlgmr.msra.gmra.mrb[0].mxu1 %v3728_v41  ;;  %551 = vmatmul.mubr.bf16.vlgmr.msra.gmra.mrb[0].mxu0 %v3728_v41  ;;  %v3833_v41 = vld [vmem:[#allocation2 + $0x124] ss:$12 sps:$4 sm:$0xff]  }
  0xaa   : > { %2790 = vmatpush3.bf16.msra.mxu1 %v3789_v15  ;;  %770 = vmatpush1.bf16.msra.mxu0 %v3787_v12  ;;  %v636_v52 = vunpack.c.l.bf16 %v3842_v48  ;;  %v637_v53 = vunpack.c.h.bf16 %v3842_v48 }
  0xab   : > { %2791 = vmatprep.subr.bf16.mxu1 %v3451_v0  ;;  %771 = vmatprep.subr.bf16.mxu0 %v3791_v18 }
  0xac   : > { %2805 = vmatprep.mubr.msk.bf16.mxu1 %vm3452_vm0, %v3451_v0  ;;  %801 = vmatprep.mubr.bf16.mxu0 %v4286_v1  ;;  %v638_v57 = vsub.f32 %v254_v43, %v636_v52  ;;  %v639_v58 = vsub.f32 %v255_v44, %v637_v53  ;;  %v3938_v43 = vld [vmem:[#allocation2 + $0x1f8] ss:$12 sps:$4 sm:$0xff]   ;;  %v3265_v44 = vld [vmem:[#allocation2 + $0x200] ss:$12 sps:$4 sm:$0xff]   ;;  %v3952_v53 = vld [vmem:[#allocation2 + $0x228] ss:$12 sps:$4 sm:$0xff]  }
  0xad   : > { %v3949_v52 = vld [vmem:[#allocation2 + $0x22c] ss:$12 sps:$4 sm:$0xff]   ;;  %4306 = vst [vmem:[#allocation17_spill] sm:$0xff] %v3952_v53 }
  0xae   : > { %2792 = vmatpush3.bf16.msra.mxu1 %v3801_v28  ;;  %772 = vmatpush1.bf16.msra.mxu0 %v3799_v25  ;;  %v640_v61 = vpack.c.bf16 %v639_v58, %v638_v57  ;;  %v3992_v57 = vld [vmem:[#allocation2 + $0x20] ss:$12 sps:$4 sm:$0xff]  }
  0xaf   : > { %2793 = vmatprep.subr.bf16.mxu1 %v3451_v0  ;;  %773 = vmatprep.subr.bf16.mxu0 %v3806_v30  ;;  %v3995_v58 = vld [vmem:[%s3622_s15 + $0x8] sm:$0xff] }
  0xb2   : > { %2794 = vmatpush3.bf16.msra.mxu1 %v3816_v24  ;;  %774 = vmatpush1.bf16.msra.mxu0 %v3814_v33 }
  0xb3   : > { %2795 = vmatprep.subr.bf16.mxu1 %v3451_v0  ;;  %775 = vmatprep.subr.bf16.mxu0 %v3825_v26 }
  0xb6   : > { %2796 = vmatpush3.bf16.msra.mxu1 %v3225_v40  ;;  %776 = vmatpush1.bf16.msra.mxu0 %v3829_v39 }
  0xb7   : > { %2797 = vmatprep.subr.bf16.mxu1 %v3451_v0  ;;  %777 = vmatprep.subr.bf16.mxu0 %v3833_v41 }
  0xba   : > { %2798 = vmatpush3.bf16.msra.mxu1 %v3229_v46  ;;  %778 = vmatpush1.bf16.msra.mxu0 %v3836_v45 }
  0xbb   : > { %2799 = vmatprep.subr.bf16.mxu1 %v3451_v0  ;;  %779 = vmatprep.subr.bf16.mxu0 %v3840_v47 }
  0xbe   : > { %2800 = vmatpush3.bf16.msra.mxu1 %v3233_v50  ;;  %780 = vmatpush1.bf16.msra.mxu0 %v3845_v49 }
  0xbf   : > { %2801 = vmatprep.subr.bf16.mxu1 %v3451_v0  ;;  %781 = vmatprep.subr.bf16.mxu0 %v3849_v51 }
  0xc2   : > { %2802 = vmatpush3.bf16.msra.mxu1 %v3237_v55  ;;  %782 = vmatpush1.bf16.msra.mxu0 %v3854_v54 }
  0xc3   : > { %2803 = vmatprep.subr.bf16.mxu1 %v3451_v0  ;;  %783 = vmatprep.subr.bf16.mxu0 %v3858_v56 }
  0xc6   : > { %2804 = vmatpush3.bf16.msra.mxu1 %v3241_v60  ;;  %784 = vmatpush1.bf16.msra.mxu0 %v3861_v59 }
  0xc7   : > { %2809 = vmatprep.subr.bf16.mxu1 %v3451_v0  ;;  %853 = vmatprep.subr.bf16.mxu0 %v3776_v62 }
  0xc9   : > { %2806 = vmatmul.mubr.bf16.vlgmr.msra.gmra.mrb[0].mxu1 %v640_v61  ;;  %802 = vmatmul.mubr.bf16.vlgmr.msra.gmra.mrb[0].mxu0 %v640_v61  ;;  %v4003_v61 = vld [vmem:[%s3622_s15 + $0x28] sm:$0xff] }
  0xca   : > { %2810 = vmatpush3.bf16.msra.mxu1 %v3789_v15  ;;  %854 = vmatpush1.bf16.msra.mxu0 %v3787_v12  ;;  %v3902_v15 = vld [vmem:[#allocation2 + $0x19c] ss:$12 sps:$4 sm:$0xff]  }
  0xcb   : > { %2811 = vmatprep.subr.bf16.mxu1 %v3451_v0  ;;  %855 = vmatprep.subr.bf16.mxu0 %v3791_v18 }
  0xcc   : > { %2825 = vmatprep.mubr.msk.bf16.mxu1 %vm3452_vm0, %v3451_v0  ;;  %885 = vmatprep.mubr.bf16.mxu0 %v4286_v1 }
  0xce   : > { %2812 = vmatpush3.bf16.msra.mxu1 %v3801_v28  ;;  %856 = vmatpush1.bf16.msra.mxu0 %v3799_v25  ;;  %v3911_v28 = vld [vmem:[#allocation2 + $0x1b4] ss:$12 sps:$4 sm:$0xff]  }
  0xcf   : > { %2813 = vmatprep.subr.bf16.mxu1 %v3451_v0  ;;  %857 = vmatprep.subr.bf16.mxu0 %v3806_v30 }
  0xd2   : > { %2814 = vmatpush3.bf16.msra.mxu1 %v3816_v24  ;;  %858 = vmatpush1.bf16.msra.mxu0 %v3814_v33  ;;  %v3924_v24 = vld [vmem:[#allocation2 + $0x1c8] ss:$12 sps:$4 sm:$0xff]  }
  0xd3   : > { %2815 = vmatprep.subr.bf16.mxu1 %v3451_v0  ;;  %859 = vmatprep.subr.bf16.mxu0 %v3825_v26 }
  0xd6   : > { %2816 = vmatpush3.bf16.msra.mxu1 %v3225_v40  ;;  %860 = vmatpush1.bf16.msra.mxu0 %v3829_v39  ;;  %v3935_v40 = vld [vmem:[#allocation2 + $0x1fc] ss:$12 sps:$4 sm:$0xff]  }
  0xd7   : > { %2817 = vmatprep.subr.bf16.mxu1 %v3451_v0  ;;  %861 = vmatprep.subr.bf16.mxu0 %v3833_v41 }
  0xda   : > { %2818 = vmatpush3.bf16.msra.mxu1 %v3229_v46  ;;  %862 = vmatpush1.bf16.msra.mxu0 %v3836_v45  ;;  %v3942_v46 = vld [vmem:[#allocation2 + $0x214] ss:$12 sps:$4 sm:$0xff]  }
  0xdb   : > { %2819 = vmatprep.subr.bf16.mxu1 %v3451_v0  ;;  %863 = vmatprep.subr.bf16.mxu0 %v3840_v47 }
  0xde   : > { %2820 = vmatpush3.bf16.msra.mxu1 %v3233_v50  ;;  %864 = vmatpush1.bf16.msra.mxu0 %v3845_v49  ;;  %v3269_v50 = vld [vmem:[#allocation2 + $0x218] ss:$12 sps:$4 sm:$0xff]  }
  0xdf   : > { %2821 = vmatprep.subr.bf16.mxu1 %v3451_v0  ;;  %865 = vmatprep.subr.bf16.mxu0 %v3849_v51 }
  0xe2   : > { %2822 = vmatpush3.bf16.msra.mxu1 %v3237_v55  ;;  %866 = vmatpush1.bf16.msra.mxu0 %v3854_v54  ;;  %v3273_v55 = vld [vmem:[#allocation2 + $0x230] ss:$12 sps:$4 sm:$0xff]  }
  0xe3   : > { %2823 = vmatprep.subr.bf16.mxu1 %v3451_v0  ;;  %867 = vmatprep.subr.bf16.mxu0 %v3858_v56 }
  0xe6   : > { %2824 = vmatpush3.bf16.msra.mxu1 %v3241_v60  ;;  %868 = vmatpush1.bf16.msra.mxu0 %v3861_v59  ;;  %v4000_v60 = vld [vmem:[%s3622_s15 + $0x18] sm:$0xff] }
  0xe7   : > { %2829 = vmatprep.subr.bf16.mxu1 %v3451_v0  ;;  %1110 = vmatprep.subr.bf16.mxu0 %v3895_v63 }
  0xe9   : > { %2826 = vmatmul.mubr.bf16.vlgmr.msra.gmra.mrb[0].mxu1 %v3842_v48  ;;  %886 = vmatmul.mubr.bf16.vlgmr.msra.gmra.mrb[0].mxu0 %v3842_v48  ;;  %v3945_v48 = vld [vmem:[#allocation2 + $0x210] ss:$12 sps:$4 sm:$0xff]  }
  0xea   : > { %2830 = vmatpush3.bf16.msra.mxu1 %v3245_v9  ;;  %1111 = vmatpush1.bf16.msra.mxu0 %v3898_v6 }
  0xeb   : > { %2831 = vmatprep.subr.bf16.mxu1 %v3451_v0  ;;  %1112 = vmatprep.subr.bf16.mxu0 %v3902_v15 }
  0xec   : > { %2845 = vmatprep.mubr.msk.bf16.mxu1 %vm3452_vm0, %v3451_v0  ;;  %1142 = vmatprep.mubr.bf16.mxu0 %v4286_v1 }
  0xee   : > { %2832 = vmatpush3.bf16.msra.mxu1 %v3249_v22  ;;  %1113 = vmatpush1.bf16.msra.mxu0 %v3907_v20 }
  0xef   : > { %2833 = vmatprep.subr.bf16.mxu1 %v3451_v0  ;;  %1114 = vmatprep.subr.bf16.mxu0 %v3911_v28 }
  0xf2   : > { %2834 = vmatpush3.bf16.msra.mxu1 %v3253_v31  ;;  %1115 = vmatpush1.bf16.msra.mxu0 %v3917_v29 }
  0xf3   : > { %2835 = vmatprep.subr.bf16.mxu1 %v3451_v0  ;;  %1116 = vmatprep.subr.bf16.mxu0 %v3921_v32 }
  0xf6   : > { %2836 = vmatpush3.bf16.msra.mxu1 %v3257_v34  ;;  %1117 = vmatpush1.bf16.msra.mxu0 %v3924_v24 }
  0xf7   : > { %2837 = vmatprep.subr.bf16.mxu1 %v3451_v0  ;;  %1118 = vmatprep.subr.bf16.mxu0 %v3928_v35 }
  0xfa   : > { %2838 = vmatpush3.bf16.msra.mxu1 %v3261_v37  ;;  %1119 = vmatpush1.bf16.msra.mxu0 %v3931_v27 }
  0xfb   : > { %2839 = vmatprep.subr.bf16.mxu1 %v3451_v0  ;;  %1120 = vmatprep.subr.bf16.mxu0 %v3935_v40 }
  0xfe   : > { %2840 = vmatpush3.bf16.msra.mxu1 %v3265_v44  ;;  %1121 = vmatpush1.bf16.msra.mxu0 %v3938_v43 }
  0xff   : > { %2841 = vmatprep.subr.bf16.mxu1 %v3451_v0  ;;  %1122 = vmatprep.subr.bf16.mxu0 %v3942_v46 }
 0x102   : > { %2842 = vmatpush3.bf16.msra.mxu1 %v3269_v50  ;;  %1123 = vmatpush1.bf16.msra.mxu0 %v3945_v48 }
 0x103   : > { %2843 = vmatprep.subr.bf16.mxu1 %v3451_v0  ;;  %1124 = vmatprep.subr.bf16.mxu0 %v3949_v52 }
 0x106   : > { %2844 = vmatpush3.bf16.msra.mxu1 %v3273_v55  ;;  %1125 = vmatpush1.bf16.msra.mxu0 %v3952_v53 }
 0x107   : > { %2849 = vmatprep.subr.bf16.mxu1 %v3451_v0  ;;  %1194 = vmatprep.subr.bf16.mxu0 %v3895_v63 }
 0x109   : > { %2846 = vmatmul.mubr.bf16.vlgmr.msra.gmra.mrb[0].mxu1 %v3797_v23  ;;  %1143 = vmatmul.mubr.bf16.vlgmr.msra.gmra.mrb[0].mxu0 %v3797_v23  ;;  %v3986_v23 = vld [vmem:[#allocation2 + $0x8] ss:$12 sps:$4 sm:$0xff]  }
 0x10a   : > { %2850 = vmatpush3.bf16.msra.mxu1 %v3245_v9  ;;  %1195 = vmatpush1.bf16.msra.mxu0 %v3898_v6  ;;  %v4006_v9 = vld [vmem:[%s3622_s15 + $0x38] sm:$0xff] }
 0x10b   : > { %2851 = vmatprep.subr.bf16.mxu1 %v3451_v0  ;;  %1196 = vmatprep.subr.bf16.mxu0 %v3902_v15 }
 0x10c   : > { %2865 = vmatprep.mubr.msk.bf16.mxu1 %vm3452_vm0, %v3451_v0  ;;  %1226 = vmatprep.mubr.bf16.mxu0 %v4286_v1 }
 0x10e   : > { %2852 = vmatpush3.bf16.msra.mxu1 %v3249_v22  ;;  %1197 = vmatpush1.bf16.msra.mxu0 %v3907_v20  ;;  %v1299_v22 = vmul.f32 0.587, %v4006_v9 }
 0x10f   : > { %2853 = vmatprep.subr.bf16.mxu1 %v3451_v0  ;;  %1198 = vmatprep.subr.bf16.mxu0 %v3911_v28 }
 0x112   : > { %2854 = vmatpush3.bf16.msra.mxu1 %v3253_v31  ;;  %1199 = vmatpush1.bf16.msra.mxu0 %v3917_v29  ;;  %v3276_v31 = vld [vmem:[#allocation2 + $0x38] ss:$12 sps:$4 sm:$0xff]  }
 0x113   : > { %2855 = vmatprep.subr.bf16.mxu1 %v3451_v0  ;;  %1200 = vmatprep.subr.bf16.mxu0 %v3921_v32 }
 0x116   : > { %2856 = vmatpush3.bf16.msra.mxu1 %v3257_v34  ;;  %1201 = vmatpush1.bf16.msra.mxu0 %v3924_v24  ;;  %v4020_v34 = vld [vmem:[%s3622_s15 + $0x48] sm:$0xff] }
 0x117   : > { %2857 = vmatprep.subr.bf16.mxu1 %v3451_v0  ;;  %1202 = vmatprep.subr.bf16.mxu0 %v3928_v35 }
 0x11a   : > { %2858 = vmatpush3.bf16.msra.mxu1 %v3261_v37  ;;  %1203 = vmatpush1.bf16.msra.mxu0 %v3931_v27 }
 0x11b   : > { %2859 = vmatprep.subr.bf16.mxu1 %v3451_v0  ;;  %1204 = vmatprep.subr.bf16.mxu0 %v3935_v40 }
 0x11e   : > { %2860 = vmatpush3.bf16.msra.mxu1 %v3265_v44  ;;  %1205 = vmatpush1.bf16.msra.mxu0 %v3938_v43 }
 0x11f   : > { %2861 = vmatprep.subr.bf16.mxu1 %v3451_v0  ;;  %1206 = vmatprep.subr.bf16.mxu0 %v3942_v46 }
 0x122   : > { %2862 = vmatpush3.bf16.msra.mxu1 %v3269_v50  ;;  %1207 = vmatpush1.bf16.msra.mxu0 %v3945_v48  ;;  %v1302_v50 = vmul.f32 0.114, %v4020_v34 }
 0x123   : > { %2863 = vmatprep.subr.bf16.mxu1 %v3451_v0  ;;  %1208 = vmatprep.subr.bf16.mxu0 %v3949_v52 }
 0x126   : > { %2864 = vmatpush3.bf16.msra.mxu1 %v3273_v55  ;;  %1209 = vmatpush1.bf16.msra.mxu0 %v3952_v53 }
 0x127   : > { %2869 = vmatprep.subr.bf16.mxu1 %v3451_v0  ;;  %1498 = vmatprep.subr.bf16.mxu0 %v3632_v2  ;;  %v1296_v2 = vmul.f32 0.299, %v3995_v58 }
 0x129   : > { %2866 = vmatmul.mubr.bf16.vlgmr.msra.gmra.mrb[0].mxu1 %v3779_v3  ;;  %1227 = vmatmul.mubr.bf16.vlgmr.msra.gmra.mrb[0].mxu0 %v3779_v3  ;;  %v1298_v3 = vmul.f32 0.587, %v4003_v61 }
 0x12a   : > { %2870 = vmatpush3.bf16.msra.mxu1 %v3986_v23  ;;  %1499 = vmatpush1.bf16.msra.mxu0 %v3637_v4  ;;  %v1297_v4 = vmul.f32 0.299, %v4000_v60 }
 0x12b   : > { %2871 = vmatprep.subr.bf16.mxu1 %v3451_v0  ;;  %1500 = vmatprep.subr.bf16.mxu0 %v3640_v5  ;;  %v4023_v5 = vld [vmem:[%s3622_s15 + $0x58] sm:$0xff]  ;;  %v1300_v37 = vadd.f32 %v1298_v3, %v1296_v2 }
 0x12c   : > { %2885 = vmatprep.mubr.msk.bf16.mxu1 %vm3452_vm0, %v3451_v0  ;;  %1530 = vmatprep.mubr.bf16.mxu0 %v4286_v1  ;;  %v1301_v44 = vadd.f32 %v1299_v22, %v1297_v4  ;;  %v1303_v55 = vmul.f32 0.114, %v4023_v5  ;;  %v3277_v1 = vld [vmem:[#allocation2 + $0x50] ss:$12 sps:$4 sm:$0xff]  }
 0x12d   : > { %v3300_v22 = vld [vmem:[#allocation2 + $0x1c] ss:$12 sps:$4 sm:$0xff]  }
 0x12e   : > { %2872 = vmatpush3.bf16.msra.mxu1 %v3992_v57  ;;  %1501 = vmatpush1.bf16.msra.mxu0 %v3646_v7  ;;  %v1304_v7 = vadd.f32 %v1302_v50, %v1300_v37  ;;  %v1305_v53 = vadd.f32 %v1303_v55, %v1301_v44  ;;  %v4307_v37 = vmov 0   ;;  %v3301_v44 = vld [vmem:[#allocation2 + $0x18] ss:$12 sps:$4 sm:$0xff]   ;;  %v3302_v50 = vld [vmem:[#allocation2 + $0x34] ss:$12 sps:$4 sm:$0xff]  }
 0x12f   : > { %2873 = vmatprep.subr.bf16.mxu1 %v3451_v0  ;;  %1502 = vmatprep.subr.bf16.mxu0 %v3649_v8  ;;  %v3278_v8 = vld [vmem:[#allocation2 + $0x68] ss:$12 sps:$4 sm:$0xff]   ;;  %v3304_v55 = vld [vmem:[#allocation2 + $0x4c] ss:$12 sps:$4 sm:$0xff]  }
 0x130   : > { %v4035_v2 = vpack.c.bf16 %v1305_v53, %v1304_v7 }
 0x132   : > { %2874 = vmatpush3.bf16.msra.mxu1 %v3276_v31  ;;  %1503 = vmatpush1.bf16.msra.mxu0 %v3656_v10  ;;  %v3279_v10 = vld [vmem:[#allocation2 + $0x80] ss:$12 sps:$4 sm:$0xff]   ;;  %v1366_v4 = vunpack.c.h.bf16 %v4035_v2 }
 0x133   : > { %2875 = vmatprep.subr.bf16.mxu1 %v3451_v0  ;;  %1504 = vmatprep.subr.bf16.mxu0 %v3659_v11  ;;  %v1365_v11 = vunpack.c.l.bf16 %v4035_v2 }
 0x134   : > { %v1368_v3 = vsub.f32 %v1305_v53, %v1366_v4  ;;  %v3299_v53 = vld [vmem:[#allocation2] ss:$12 sps:$4 sm:$0xff]   ;;  %v3308_v4 = vld [vmem:[#allocation2 + $0x7c] ss:$12 sps:$4 sm:$0xff]  }
 0x136   : > { %2876 = vmatpush3.bf16.msra.mxu1 %v3277_v1  ;;  %1505 = vmatpush1.bf16.msra.mxu0 %v3666_v13  ;;  %v3280_v13 = vld [vmem:[#allocation2 + $0x98] ss:$12 sps:$4 sm:$0xff]  }
 0x137   : > { %2877 = vmatprep.subr.bf16.mxu1 %v3451_v0  ;;  %1506 = vmatprep.subr.bf16.mxu0 %v3669_v14  ;;  %v1367_v14 = vsub.f32 %v1304_v7, %v1365_v11  ;;  %v3305_v7 = vld [vmem:[#allocation2 + $0x48] ss:$12 sps:$4 sm:$0xff]   ;;  %v3306_v11 = vld [vmem:[#allocation2 + $0x64] ss:$12 sps:$4 sm:$0xff]  }
 0x13a   : > { %2878 = vmatpush3.bf16.msra.mxu1 %v3278_v8  ;;  %1507 = vmatpush1.bf16.msra.mxu0 %v3676_v16  ;;  %v3281_v16 = vld [vmem:[#allocation2 + $0xb0] ss:$12 sps:$4 sm:$0xff]  }
 0x13b   : > { %2879 = vmatprep.subr.bf16.mxu1 %v3451_v0  ;;  %1508 = vmatprep.subr.bf16.mxu0 %v3679_v17  ;;  %v1369_v17 = vpack.c.bf16 %v1368_v3, %v1367_v14  ;;  %v1315_v14 = vmul.f32 0.5, %v4023_v5  ;;  %v3284_v3 = vld [vmem:[#allocation2 + $0xf8] ss:$12 sps:$4 sm:$0xff]  }
 0x13e   : > { %2880 = vmatpush3.bf16.msra.mxu1 %v3279_v10  ;;  %1509 = vmatpush1.bf16.msra.mxu0 %v3683_v19  ;;  %v3298_v19 = vld [vmem:[#allocation2 + $0x4] ss:$12 sps:$4 sm:$0xff]  }
 0x13f   : > { %2881 = vmatprep.subr.bf16.mxu1 %v3451_v0  ;;  %1510 = vmatprep.subr.bf16.mxu0 %v3689_v21 }
 0x142   : > { %2882 = vmatpush3.bf16.msra.mxu1 %v3280_v13  ;;  %1511 = vmatpush1.bf16.msra.mxu0 %v3720_v36 }
 0x143   : > { %2883 = vmatprep.subr.bf16.mxu1 %v3451_v0  ;;  %1512 = vmatprep.subr.bf16.mxu0 %v3723_v38 }
 0x146   : > { %2884 = vmatpush3.bf16.msra.mxu1 %v3281_v16  ;;  %1513 = vmatpush1.bf16.msra.mxu0 %v3732_v42 }
 0x147   : > { %2889 = vmatprep.subr.bf16.mxu1 %v3451_v0  ;;  %1582 = vmatprep.subr.bf16.mxu0 %v3298_v19  ;;  %v3285_v19 = vld [vmem:[#allocation2 + $0x110] ss:$12 sps:$4 sm:$0xff]  }
 0x149   : > { %2886 = vmatmul.mubr.bf16.vlgmr.msra.gmra.mrb[4].mxu1 %v1369_v17  ;;  %1531 = vmatmul.mubr.bf16.vlgmr.msra.gmra.mrb[4].mxu0 %v1369_v17 }
 0x14a   : > { %2890 = vmatpush3.bf16.msra.mxu1 %v3986_v23  ;;  %1583 = vmatpush1.bf16.msra.mxu0 %v3299_v53  ;;  %v3303_v23 = vld [vmem:[#allocation2 + $0x30] ss:$12 sps:$4 sm:$0xff]  }
 0x14b   : > { %2891 = vmatprep.subr.bf16.mxu1 %v3451_v0  ;;  %1584 = vmatprep.subr.bf16.mxu0 %v3300_v22 }
 0x14c   : > { %2905 = vmatprep.mubr.msk.bf16.mxu1 %vm3452_vm0, %v3451_v0  ;;  %1614 = vmatprep.mubr.bf16.mxu0 %v4307_v37 }
 0x14e   : > { %2892 = vmatpush3.bf16.msra.mxu1 %v3992_v57  ;;  %1585 = vmatpush1.bf16.msra.mxu0 %v3301_v44  ;;  %v3307_v57 = vld [vmem:[#allocation2 + $0x60] ss:$12 sps:$4 sm:$0xff]   ;;  %v3286_v44 = vld [vmem:[#allocation2 + $0x128] ss:$12 sps:$4 sm:$0xff]  }
 0x14f   : > { %2893 = vmatprep.subr.bf16.mxu1 %v3451_v0  ;;  %1586 = vmatprep.subr.bf16.mxu0 %v3302_v50 }
 0x152   : > { %2894 = vmatpush3.bf16.msra.mxu1 %v3276_v31  ;;  %1587 = vmatpush1.bf16.msra.mxu0 %v3303_v23  ;;  %v3309_v31 = vld [vmem:[#allocation2 + $0x78] ss:$12 sps:$4 sm:$0xff]   ;;  %v3287_v23 = vld [vmem:[#allocation2 + $0x140] ss:$12 sps:$4 sm:$0xff]  }
 0x153   : > { %2895 = vmatprep.subr.bf16.mxu1 %v3451_v0  ;;  %1588 = vmatprep.subr.bf16.mxu0 %v3304_v55 }
 0x156   : > { %2896 = vmatpush3.bf16.msra.mxu1 %v3277_v1  ;;  %1589 = vmatpush1.bf16.msra.mxu0 %v3305_v7  ;;  %v4066_v1 = vld [vmem:[#allocation2 + $0xc8] ss:$12 sps:$4 sm:$0xff]  }
 0x157   : > { %2897 = vmatprep.subr.bf16.mxu1 %v3451_v0  ;;  %1590 = vmatprep.subr.bf16.mxu0 %v3306_v11  ;;  %v3288_v11 = vld [vmem:[#allocation2 + $0x158] ss:$12 sps:$4 sm:$0xff]  }
 0x15a   : > { %2898 = vmatpush3.bf16.msra.mxu1 %v3278_v8  ;;  %1591 = vmatpush1.bf16.msra.mxu0 %v3307_v57  ;;  %v1308_v8 = vmul.f32 -0.168736, %v3995_v58 }
 0x15b   : > { %2899 = vmatprep.subr.bf16.mxu1 %v3451_v0  ;;  %1592 = vmatprep.subr.bf16.mxu0 %v3308_v4 }
 0x15e   : > { %2900 = vmatpush3.bf16.msra.mxu1 %v3279_v10  ;;  %1593 = vmatpush1.bf16.msra.mxu0 %v3309_v31  ;;  %v3289_v31 = vld [vmem:[#allocation2 + $0x170] ss:$12 sps:$4 sm:$0xff]  }
 0x15f   : > { %2901 = vmatprep.subr.bf16.mxu1 %v3451_v0  ;;  %1594 = vmatprep.subr.bf16.mxu0 %v3689_v21  ;;  %v1309_v21 = vmul.f32 -0.168736, %v4000_v60 }
 0x162   : > { %2902 = vmatpush3.bf16.msra.mxu1 %v3280_v13  ;;  %1595 = vmatpush1.bf16.msra.mxu0 %v3720_v36  ;;  %v1310_v36 = vmul.f32 -0.331264, %v4003_v61  ;;  %v1314_v13 = vmul.f32 0.5, %v4020_v34 }
 0x163   : > { %2903 = vmatprep.subr.bf16.mxu1 %v3451_v0  ;;  %1596 = vmatprep.subr.bf16.mxu0 %v3723_v38  ;;  %v1311_v38 = vmul.f32 -0.331264, %v4006_v9 }
 0x165   : > { %v1313_v10 = vadd.f32 %v1311_v38, %v1309_v21 }
 0x166   : > { %2904 = vmatpush3.bf16.msra.mxu1 %v3281_v16  ;;  %1597 = vmatpush1.bf16.msra.mxu0 %v3732_v42  ;;  %v3283_v42 = vld [vmem:[#allocation2 + $0xe0] ss:$12 sps:$4 sm:$0xff]  }
 0x167   : > { %2909 = vmatprep.subr.bf16.mxu1 %v3451_v0  ;;  %1832 = vmatprep.subr.bf16.mxu0 %v3776_v62  ;;  %v1317_v17 = vadd.f32 %v1315_v14, %v1313_v10 }
 0x169   : > { %2906 = vmatmul.mubr.bf16.vlgmr.msra.gmra.mrb[4].mxu1 %v4035_v2  ;;  %1615 = vmatmul.mubr.bf16.vlgmr.msra.gmra.mrb[4].mxu0 %v4035_v2  ;;  %v1312_v2 = vadd.f32 %v1310_v36, %v1308_v8  ;;  %v1319_v22 = vadd.f32 128.0, %v1317_v17  ;;  %v3297_v36 = vld [vmem:[#allocation2 + $0x230] ss:$12 sps:$4 sm:$0xff]  }
 0x16a   : > { %2910 = vmatpush3.bf16.msra.mxu1 %v4066_v1  ;;  %1833 = vmatpush1.bf16.msra.mxu0 %v3787_v12 }
 0x16b   : > { %2911 = vmatprep.subr.bf16.mxu1 %v3451_v0  ;;  %1834 = vmatprep.subr.bf16.mxu0 %v3791_v18  ;;  %v1316_v16 = vadd.f32 %v1314_v13, %v1312_v2 }
 0x16c   : > { %2925 = vmatprep.mubr.msk.bf16.mxu1 %vm3452_vm0, %v3451_v0  ;;  %1864 = vmatprep.mubr.bf16.mxu0 %v4307_v37 }
 0x16d   : > { %v1318_v53 = vadd.f32 128.0, %v1316_v16 }
 0x16e   : > { %2912 = vmatpush3.bf16.msra.mxu1 %v3283_v42  ;;  %1835 = vmatpush1.bf16.msra.mxu0 %v3799_v25 }
 0x16f   : > { %2913 = vmatprep.subr.bf16.mxu1 %v3451_v0  ;;  %1836 = vmatprep.subr.bf16.mxu0 %v3806_v30  ;;  %v1698_v50 = vpack.c.bf16 %v1319_v22, %v1318_v53 }
 0x171   : > { %v1699_v55 = vunpack.c.l.bf16 %v1698_v50  ;;  %v1700_v7 = vunpack.c.h.bf16 %v1698_v50 }
 0x172   : > { %2914 = vmatpush3.bf16.msra.mxu1 %v3284_v3  ;;  %1837 = vmatpush1.bf16.msra.mxu0 %v3814_v33 }
 0x173   : > { %2915 = vmatprep.subr.bf16.mxu1 %v3451_v0  ;;  %1838 = vmatprep.subr.bf16.mxu0 %v3825_v26  ;;  %v1701_v57 = vsub.f32 %v1318_v53, %v1699_v55  ;;  %v1702_v4 = vsub.f32 %v1319_v22, %v1700_v7 }
 0x175   : > { %v1703_v8 = vpack.c.bf16 %v1702_v4, %v1701_v57 }
 0x176   : > { %2916 = vmatpush3.bf16.msra.mxu1 %v3285_v19  ;;  %1839 = vmatpush1.bf16.msra.mxu0 %v3829_v39 }
 0x177   : > { %2917 = vmatprep.subr.bf16.mxu1 %v3451_v0  ;;  %1840 = vmatprep.subr.bf16.mxu0 %v3833_v41 }
 0x17a   : > { %2918 = vmatpush3.bf16.msra.mxu1 %v3286_v44  ;;  %1841 = vmatpush1.bf16.msra.mxu0 %v3836_v45 }
 0x17b   : > { %2919 = vmatprep.subr.bf16.mxu1 %v3451_v0  ;;  %1842 = vmatprep.subr.bf16.mxu0 %v3840_v47 }
 0x17e   : > { %2920 = vmatpush3.bf16.msra.mxu1 %v3287_v23  ;;  %1843 = vmatpush1.bf16.msra.mxu0 %v3845_v49 }
 0x17f   : > { %2921 = vmatprep.subr.bf16.mxu1 %v3451_v0  ;;  %1844 = vmatprep.subr.bf16.mxu0 %v3849_v51 }
 0x182   : > { %2922 = vmatpush3.bf16.msra.mxu1 %v3288_v11  ;;  %1845 = vmatpush1.bf16.msra.mxu0 %v3854_v54 }
 0x183   : > { %2923 = vmatprep.subr.bf16.mxu1 %v3451_v0  ;;  %1846 = vmatprep.subr.bf16.mxu0 %v3858_v56 }
 0x186   : > { %2924 = vmatpush3.bf16.msra.mxu1 %v3289_v31  ;;  %1847 = vmatpush1.bf16.msra.mxu0 %v3861_v59 }
 0x187   : > { %2929 = vmatprep.subr.bf16.mxu1 %v3451_v0  ;;  %1916 = vmatprep.subr.bf16.mxu0 %v3776_v62  ;;  %v4132_v62 = vld [vmem:[#allocation2 + $0x188] ss:$12 sps:$4 sm:$0xff]  }
 0x189   : > { %2926 = vmatmul.mubr.bf16.vlgmr.msra.gmra.mrb[4].mxu1 %v1703_v8  ;;  %1865 = vmatmul.mubr.bf16.vlgmr.msra.gmra.mrb[4].mxu0 %v1703_v8 }
 0x18a   : > { %2930 = vmatpush3.bf16.msra.mxu1 %v4066_v1  ;;  %1917 = vmatpush1.bf16.msra.mxu0 %v3787_v12  ;;  %v1320_v12 = vmul.f32 0.5, %v3995_v58  ;;  %v3294_v58 = vld [vmem:[#allocation2 + $0x1e8] ss:$12 sps:$4 sm:$0xff]  }
 0x18b   : > { %2931 = vmatprep.subr.bf16.mxu1 %v3451_v0  ;;  %1918 = vmatprep.subr.bf16.mxu0 %v3791_v18  ;;  %v1321_v18 = vmul.f32 0.5, %v4000_v60 }
 0x18c   : > { %2945 = vmatprep.mubr.msk.bf16.mxu1 %vm3452_vm0, %v3451_v0  ;;  %1948 = vmatprep.mubr.bf16.mxu0 %v4307_v37 }
 0x18e   : > { %2932 = vmatpush3.bf16.msra.mxu1 %v3283_v42  ;;  %1919 = vmatpush1.bf16.msra.mxu0 %v3799_v25  ;;  %v1322_v25 = vmul.f32 -0.418688, %v4003_v61  ;;  %v3295_v61 = vld [vmem:[#allocation2 + $0x200] ss:$12 sps:$4 sm:$0xff]  }
 0x18f   : > { %2933 = vmatprep.subr.bf16.mxu1 %v3451_v0  ;;  %1920 = vmatprep.subr.bf16.mxu0 %v3806_v30  ;;  %v1323_v30 = vmul.f32 -0.418688, %v4006_v9  ;;  %v4308_v42 = vld [vmem:[#allocation17_spill] sm:$0xff] }
 0x192   : > { %2934 = vmatpush3.bf16.msra.mxu1 %v3284_v3  ;;  %1921 = vmatpush1.bf16.msra.mxu0 %v3814_v33  ;;  %v3291_v33 = vld [vmem:[#allocation2 + $0x1a0] ss:$12 sps:$4 sm:$0xff]  }
 0x193   : > { %2935 = vmatprep.subr.bf16.mxu1 %v3451_v0  ;;  %1922 = vmatprep.subr.bf16.mxu0 %v3825_v26  ;;  %v1324_v26 = vadd.f32 %v1322_v25, %v1320_v12 }
 0x196   : > { %2936 = vmatpush3.bf16.msra.mxu1 %v3285_v19  ;;  %1923 = vmatpush1.bf16.msra.mxu0 %v3829_v39  ;;  %v1325_v39 = vadd.f32 %v1323_v30, %v1321_v18 }
 0x197   : > { %2937 = vmatprep.subr.bf16.mxu1 %v3451_v0  ;;  %1924 = vmatprep.subr.bf16.mxu0 %v3833_v41  ;;  %v1326_v41 = vmul.f32 -0.081312, %v4020_v34 }
 0x19a   : > { %2938 = vmatpush3.bf16.msra.mxu1 %v3286_v44  ;;  %1925 = vmatpush1.bf16.msra.mxu0 %v3836_v45  ;;  %v1327_v45 = vmul.f32 -0.081312, %v4023_v5  ;;  %v3296_v5 = vld [vmem:[#allocation2 + $0x218] ss:$12 sps:$4 sm:$0xff]  }
 0x19b   : > { %2939 = vmatprep.subr.bf16.mxu1 %v3451_v0  ;;  %1926 = vmatprep.subr.bf16.mxu0 %v3840_v47  ;;  %v3292_v47 = vld [vmem:[#allocation2 + $0x1b8] ss:$12 sps:$4 sm:$0xff]  }
 0x19e   : > { %2940 = vmatpush3.bf16.msra.mxu1 %v3287_v23  ;;  %1927 = vmatpush1.bf16.msra.mxu0 %v3845_v49  ;;  %v1328_v49 = vadd.f32 %v1326_v41, %v1324_v26 }
 0x19f   : > { %2941 = vmatprep.subr.bf16.mxu1 %v3451_v0  ;;  %1928 = vmatprep.subr.bf16.mxu0 %v3849_v51  ;;  %v1329_v51 = vadd.f32 %v1327_v45, %v1325_v39 }
 0x1a2   : > { %2942 = vmatpush3.bf16.msra.mxu1 %v3288_v11  ;;  %1929 = vmatpush1.bf16.msra.mxu0 %v3854_v54  ;;  %v3293_v54 = vld [vmem:[#allocation2 + $0x1d0] ss:$12 sps:$4 sm:$0xff]  }
 0x1a3   : > { %2943 = vmatprep.subr.bf16.mxu1 %v3451_v0  ;;  %1930 = vmatprep.subr.bf16.mxu0 %v3858_v56  ;;  %v1330_v56 = vadd.f32 128.0, %v1328_v49 }
 0x1a6   : > { %2944 = vmatpush3.bf16.msra.mxu1 %v3289_v31  ;;  %1931 = vmatpush1.bf16.msra.mxu0 %v3861_v59  ;;  %v1331_v59 = vadd.f32 128.0, %v1329_v51 }
 0x1a7   : > { %2949 = vmatprep.subr.bf16.mxu1 %v3451_v0  ;;  %2172 = vmatprep.subr.bf16.mxu0 %v3895_v63 }
 0x1a8   : > { %v2038_v60 = vpack.c.bf16 %v1331_v59, %v1330_v56 }
 0x1a9   : > { %2946 = vmatmul.mubr.bf16.vlgmr.msra.gmra.mrb[4].mxu1 %v1698_v50  ;;  %1949 = vmatmul.mubr.bf16.vlgmr.msra.gmra.mrb[4].mxu0 %v1698_v50 }
 0x1aa   : > { %2950 = vmatpush3.bf16.msra.mxu1 %v4132_v62  ;;  %2173 = vmatpush1.bf16.msra.mxu0 %v3898_v6  ;;  %v2039_v9 = vunpack.c.l.bf16 %v2038_v60  ;;  %v2040_v34 = vunpack.c.h.bf16 %v2038_v60 }
 0x1ab   : > { %2951 = vmatprep.subr.bf16.mxu1 %v3451_v0  ;;  %2174 = vmatprep.subr.bf16.mxu0 %v3902_v15 }
 0x1ac   : > { %2965 = vmatprep.mubr.msk.bf16.mxu1 %vm3452_vm0, %v3451_v0  ;;  %2204 = vmatprep.mubr.bf16.mxu0 %v4307_v37  ;;  %v2041_v1 = vsub.f32 %v1330_v56, %v2039_v9  ;;  %v2042_v21 = vsub.f32 %v1331_v59, %v2040_v34 }
 0x1ae   : > { %2952 = vmatpush3.bf16.msra.mxu1 %v3291_v33  ;;  %2175 = vmatpush1.bf16.msra.mxu0 %v3907_v20  ;;  %v2043_v38 = vpack.c.bf16 %v2042_v21, %v2041_v1 }
 0x1af   : > { %2953 = vmatprep.subr.bf16.mxu1 %v3451_v0  ;;  %2176 = vmatprep.subr.bf16.mxu0 %v3911_v28 }
 0x1b2   : > { %2954 = vmatpush3.bf16.msra.mxu1 %v3292_v47  ;;  %2177 = vmatpush1.bf16.msra.mxu0 %v3917_v29 }
 0x1b3   : > { %2955 = vmatprep.subr.bf16.mxu1 %v3451_v0  ;;  %2178 = vmatprep.subr.bf16.mxu0 %v3921_v32 }
 0x1b6   : > { %2956 = vmatpush3.bf16.msra.mxu1 %v3293_v54  ;;  %2179 = vmatpush1.bf16.msra.mxu0 %v3924_v24 }
 0x1b7   : > { %2957 = vmatprep.subr.bf16.mxu1 %v3451_v0  ;;  %2180 = vmatprep.subr.bf16.mxu0 %v3928_v35 }
 0x1ba   : > { %2958 = vmatpush3.bf16.msra.mxu1 %v3294_v58  ;;  %2181 = vmatpush1.bf16.msra.mxu0 %v3931_v27 }
 0x1bb   : > { %2959 = vmatprep.subr.bf16.mxu1 %v3451_v0  ;;  %2182 = vmatprep.subr.bf16.mxu0 %v3935_v40 }
 0x1be   : > { %2960 = vmatpush3.bf16.msra.mxu1 %v3295_v61  ;;  %2183 = vmatpush1.bf16.msra.mxu0 %v3938_v43 }
 0x1bf   : > { %2961 = vmatprep.subr.bf16.mxu1 %v3451_v0  ;;  %2184 = vmatprep.subr.bf16.mxu0 %v3942_v46 }
 0x1c2   : > { %2962 = vmatpush3.bf16.msra.mxu1 %v3296_v5  ;;  %2185 = vmatpush1.bf16.msra.mxu0 %v3945_v48 }
 0x1c3   : > { %2963 = vmatprep.subr.bf16.mxu1 %v3451_v0  ;;  %2186 = vmatprep.subr.bf16.mxu0 %v3949_v52 }
 0x1c6   : > { %2964 = vmatpush3.bf16.msra.mxu1 %v3297_v36  ;;  %2187 = vmatpush1.bf16.msra.mxu0 %v4308_v42 }
 0x1c7   : > { %2969 = vmatprep.subr.bf16.mxu1 %v3451_v0  ;;  %2256 = vmatprep.subr.bf16.mxu0 %v3895_v63 }
 0x1c9   : > { %2966 = vmatmul.mubr.bf16.vlgmr.msra.gmra.mrb[4].mxu1 %v2043_v38  ;;  %2205 = vmatmul.mubr.bf16.vlgmr.msra.gmra.mrb[4].mxu0 %v2043_v38 }
 0x1ca   : > { %2970 = vmatpush3.bf16.msra.mxu1 %v4132_v62  ;;  %2257 = vmatpush1.bf16.msra.mxu0 %v3898_v6 }
 0x1cb   : > { %2971 = vmatprep.subr.bf16.mxu1 %v3451_v0  ;;  %2258 = vmatprep.subr.bf16.mxu0 %v3902_v15 }
 0x1cc   : > { %2985 = vmatprep.mubr.msk.bf16.mxu1 %vm3452_vm0, %v3451_v0  ;;  %2288 = vmatprep.mubr.bf16.mxu0 %v4307_v37 }
 0x1ce   : > { %2972 = vmatpush3.bf16.msra.mxu1 %v3291_v33  ;;  %2259 = vmatpush1.bf16.msra.mxu0 %v3907_v20 }
 0x1cf   : > { %2973 = vmatprep.subr.bf16.mxu1 %v3451_v0  ;;  %2260 = vmatprep.subr.bf16.mxu0 %v3911_v28 }
 0x1d2   : > { %2974 = vmatpush3.bf16.msra.mxu1 %v3292_v47  ;;  %2261 = vmatpush1.bf16.msra.mxu0 %v3917_v29 }
 0x1d3   : > { %2975 = vmatprep.subr.bf16.mxu1 %v3451_v0  ;;  %2262 = vmatprep.subr.bf16.mxu0 %v3921_v32 }
 0x1d6   : > { %2976 = vmatpush3.bf16.msra.mxu1 %v3293_v54  ;;  %2263 = vmatpush1.bf16.msra.mxu0 %v3924_v24 }
 0x1d7   : > { %2977 = vmatprep.subr.bf16.mxu1 %v3451_v0  ;;  %2264 = vmatprep.subr.bf16.mxu0 %v3928_v35 }
 0x1da   : > { %2978 = vmatpush3.bf16.msra.mxu1 %v3294_v58  ;;  %2265 = vmatpush1.bf16.msra.mxu0 %v3931_v27 }
 0x1db   : > { %2979 = vmatprep.subr.bf16.mxu1 %v3451_v0  ;;  %2266 = vmatprep.subr.bf16.mxu0 %v3935_v40 }
 0x1de   : > { %2980 = vmatpush3.bf16.msra.mxu1 %v3295_v61  ;;  %2267 = vmatpush1.bf16.msra.mxu0 %v3938_v43 }
 0x1df   : > { %2981 = vmatprep.subr.bf16.mxu1 %v3451_v0  ;;  %2268 = vmatprep.subr.bf16.mxu0 %v3942_v46 }
 0x1e2   : > { %2982 = vmatpush3.bf16.msra.mxu1 %v3296_v5  ;;  %2269 = vmatpush1.bf16.msra.mxu0 %v3945_v48 }
 0x1e3   : > { %2983 = vmatprep.subr.bf16.mxu1 %v3451_v0  ;;  %2270 = vmatprep.subr.bf16.mxu0 %v3949_v52 }
 0x1e6   : > { %2984 = vmatpush3.bf16.msra.mxu1 %v3297_v36  ;;  %2271 = vmatpush1.bf16.msra.mxu0 %v4308_v42 }
 0x1e9   : > { %2986 = vmatmul.mubr.bf16.vlgmr.msra.gmra.mrb[4].mxu1 %v2038_v60  ;;  %2289 = vmatmul.mubr.bf16.vlgmr.msra.gmra.mrb[4].mxu0 %v2038_v60 }
 0x1fc   : > { %v1271_v63 = vpop.f32.mrb[0].mxu1  ;;  %v1228_v6 = vpop.f32.mrb[0].mxu0 }
 0x1fd   : > { %1286 = vst [vmem:[%s4198_s23 + $0x10] sm:$0xff] %v1271_v63  ;;  %1284 = vst [vmem:[%s4198_s23] sm:$0xff] %v1228_v6  ;;  %v2867_v0 = vpop.f32.mrb[1].mxu1  ;;  %v1230_v15 = vpop.f32.mrb[1].mxu0 }
 0x1fe   : > { %1285 = vst [vmem:[%s4198_s23 + $0x8] sm:$0xff] %v1230_v15  ;;  %v1274_v20 = vpop.f32.mrb[2].mxu1  ;;  %v1232_v28 = vpop.f32.mrb[2].mxu0 }
 0x1ff   : > { %1289 = vst [vmem:[%s4198_s23 + $0x40] sm:$0xff] %v1274_v20  ;;  %1287 = vst [vmem:[%s4198_s23 + $0x30] sm:$0xff] %v1232_v28  ;;  %v2868_v29 = vpop.f32.mrb[3].mxu1  ;;  %v1234_v32 = vpop.f32.mrb[3].mxu0 }
 0x200   : > { %1288 = vst [vmem:[%s4198_s23 + $0x38] sm:$0xff] %v1234_v32 }
 0x2bc   : > { %v2333_v24 = vpop.f32.mrb[4].mxu1  ;;  %v2290_v35 = vpop.f32.mrb[4].mxu0 }
 0x2bd   : > { %2348 = vst [vmem:[%s4198_s23 + $0x28] sm:$0xff] %v2333_v24  ;;  %2346 = vst [vmem:[%s4198_s23 + $0x18] sm:$0xff] %v2290_v35  ;;  %v2987_v27 = vpop.f32.mrb[5].mxu1  ;;  %v2292_v40 = vpop.f32.mrb[5].mxu0 }
 0x2be   : > { %2347 = vst [vmem:[%s4198_s23 + $0x20] sm:$0xff] %v2292_v40  ;;  %v2336_v43 = vpop.f32.mrb[6].mxu1  ;;  %v2294_v46 = vpop.f32.mrb[6].mxu0 }
 0x2bf   : > { %2351 = vst [vmem:[%s4198_s23 + $0x58] sm:$0xff] %v2336_v43  ;;  %2349 = vst [vmem:[%s4198_s23 + $0x48] sm:$0xff] %v2294_v46  ;;  %v2988_v48 = vpop.f32.mrb[7].mxu1  ;;  %v2296_v52 = vpop.f32.mrb[7].mxu0 }
 0x2c0   : > { %2350 = vst [vmem:[%s4198_s23 + $0x50] sm:$0xff] %v2296_v52 }
 0x2c1   : > { %3351 = shalt.err (!%p3348_p0)
}
 0x2c2   : > { %s3352_s28 = scalar_lea.hbm %s4214_s22, 1536  ;;  %s3356_s19 = scalar_lea.hbm %s4276_s2, 12288 }
 0x2c3   : > { %p3353_p1 = scmp.ne.s32.totalorder %s4214_s22, %s3352_s28  ;;  %p3357_p6 = scmp.lt.u32.totalorder %s4214_s22, %s4276_s2 }
 0x2c4   : > { %p3358_p8 = scmp.lt.u32.totalorder %s3356_s19, %s3352_s28  ;;  %p3360_p13 = scmp.lt.u32.totalorder %s3352_s28, %s4214_s22 }
 0x2c5   : > { %p3354_p5 = pnand %p3353_p1, %p4309_p2 }
 0x2c6   : > { %p3359_p9 = por %p3358_p8, %p3357_p6 }
 0x2c7   : > { %p3355_p3 = pneg %p3354_p5 }
 0x2c8   : > { %p3361_p4 = por %p3360_p13, %p3359_p9 }
 0x2ca   : > { %p3362_p7 = pnand %p3361_p4, %p3355_p3 }
 0x2cc   : > { %3365 = shalt.err (!%p3362_p7)
}
 0x2cd   : > { %s3455_s23 = smov 768   ;;  %s3456_s24 = smov 48  }
 0x2ce   : > { %3087 = dma.vmem_to_hbm [thread:$0]  (%p4309_p2), %s4216_s5, 1536, %s4214_s22, %s2353_s12, %s3455_s23, %s3455_s23, %s3456_s24  }
 0x2cf PF: > { %p3099_p10 = scmp.ge.s32.totalorder %s3440_s16, 2  ;;  %s2384_s25 = sand.u32 1, %s3412_s9  }
 0x2d0   : > { %p4310_p11 = scmp.ne.s32.totalorder %s4298_s29, 0  ;;  %s2385_s3 = scalar_lea.sflag [#allocation4], %s2384_s25 }
 0x2d2   : > { %p3094_p12 = pnand %p3099_p10, %p4310_p11 }
 0x2d4   : > { %3407 = dma.done.wait (!%p3094_p12), %s2385_s3, 1536  }
 0x2d5   : > { %3409 = vsyncadd (!%p3094_p12), %s2385_s3, 4294965760  ;;  %s19_s16 = sadd.s32 1, %s3440_s16   ;;  %s4311_s13 = sld [smem:[#allocation14_spill]] }
 0x2d6   : > { %p16_p0 = scmp.ge.s32.totalorder %s19_s16, 10   ;;  %s4312_s26 = sld [smem:[#allocation15_spill]] }
 0x2d7   : > { %s4313_s15 = sld [smem:[#allocation16_spill]]  ;;  %s4314_s9 = smov %s3416_s10 }
 0x2d8   : > { %s4315_s10 = smov %s3420_s11  ;;  %s4316_s11 = smov %s3556_s30 }
 0x2d9   : > { %s4317_s12 = smov %s3432_s14  ;;  %18 = sbr.rel (!%p16_p0) target bundleno = 10 (0xa), region = 87 }
 0x2dc   : > { %s4318_s14 = smov %s4312_s26 }
 0x2e0   :  { %2390 = vsyncpa [#allocation3], 1 }
 0x2e1   :  { %2392 = vsyncpa [#allocation3 + $0x1], 1 }
 0x2e2   :  { %2393 = vsyncpa [#allocation6], 1 }
 0x2e3   :  { %2395 = vsyncpa [#allocation6 + $0x1], 1 }
 0x2e4   :  { %2396 = vsyncpa [#allocation4], 1 }
 0x2e5   :  { %2398 = vsyncpa [#allocation4 + $0x1], 1 }

</bundles_post_ra>
